<compile_context>
chip_gen: v7x
topology: tpu7x:2x2x1
jax: 0.10.0
libtpu: 0.0.40
codegen_flags: <defaults>
</compile_context>

<pallas_src>
import jax
import jax.numpy as jnp
from jax.experimental import pallas as pl
from jax.experimental.pallas import tpu as pltpu

LANE = 128
MAX_TILE_NG = 512              # packed-instance groups per pipelined x tile
MAX_TILE_B = 128
FULL_N_TILE_BYTES = 4 << 20    # single full-N x tile allowed up to this size


def _round_up(a, b):
    return (a + b - 1) // b * b


# --------------------------------------------------------------------------- #
# Kernel
# --------------------------------------------------------------------------- #
def _mlpmil_kernel(x_ref,
                   w1_ref, b1_ref, w2_ref, b2_ref, w3_ref, b3_ref,
                   w4_ref, b4_ref,
                   out_ref, acc_ref):
    k = pl.program_id(1)

    @pl.when(k == 0)
    def _init():
        acc_ref[...] = jnp.zeros_like(acc_ref)

    # MIL mean pooling: accumulate the (lane-packed) instance sum in f32.
    acc_ref[...] += jnp.sum(x_ref[...].astype(jnp.float32), axis=1)

    @pl.when(k == pl.num_programs(1) - 1)
    def _finalize():
        # 1/N and all BN scale/shifts are pre-folded into the weights/biases.
        h = acc_ref[...]                                             # (TB, DP)
        h = jnp.dot(h, w1_ref[...], preferred_element_type=jnp.float32) + b1_ref[...]
        h = jnp.maximum(h, 0.0)
        h = jnp.dot(h, w2_ref[...], preferred_element_type=jnp.float32) + b2_ref[...]
        h = jnp.maximum(h, 0.0)
        h = jnp.dot(h, w3_ref[...], preferred_element_type=jnp.float32) + b3_ref[...]
        h = jnp.maximum(h, 0.0)
        # Dropout(0.3): identity in eval mode.
        logits = jnp.dot(h, w4_ref[...], preferred_element_type=jnp.float32) + b4_ref[...]
        out_ref[...] = logits.astype(out_ref.dtype)


# --------------------------------------------------------------------------- #
# Parameter preparation: BN + 1/N folding, lane packing/padding
# --------------------------------------------------------------------------- #
def prepare_params(params, n_instances, eps=1e-5):
    w1, b1 = params["w1"], params["b1"]
    w2, b2 = params["w2"], params["b2"]
    w3, b3 = params["w3"], params["b3"]
    w4, b4 = params["w4"], params["b4"]
    din, hid = w1.shape
    dout = w4.shape[1]

    def bn_fold(g, be, m, v):
        s = g / jnp.sqrt(v + eps)
        return s, be - m * s

    s1, t1 = bn_fold(params["g1"], params["be1"], params["m1"], params["v1"])
    s2, t2 = bn_fold(params["g2"], params["be2"], params["m2"], params["v2"])
    s3, t3 = bn_fold(params["g3"], params["be3"], params["m3"], params["v3"])

    # Fold BN_i into Linear_{i+1}:  (h*s + t) @ W + b == h @ (s^T ⊙ W) + (t@W + b)
    w2f = w2 * s1.reshape(-1, 1); b2f = t1 @ w2 + b2
    w3f = w3 * s2.reshape(-1, 1); b3f = t2 @ w3 + b3
    w4f = w4 * s3.reshape(-1, 1); b4f = t3 @ w4 + b4

    # Fold the mean's 1/N into Linear_1 and replicate it `pack` times so the
    # lane-packed pooled sum collapses correctly through the first matmul.
    pack = LANE // din if (din < LANE and LANE % din == 0) else 1
    w1f = jnp.concatenate([w1 / float(n_instances)] * pack, axis=0)

    dp = _round_up(pack * din, LANE)
    hp = _round_up(hid, LANE)
    dop = _round_up(dout, LANE)

    def padw(w, r, c):
        return jnp.pad(w, ((0, r - w.shape[0]), (0, c - w.shape[1])))

    f32 = jnp.float32
    return dict(
        w1=padw(w1f, dp, hp).astype(f32), b1=padw(b1, 1, hp).astype(f32),
        w2=padw(w2f, hp, hp).astype(f32), b2=padw(b2f, 1, hp).astype(f32),
        w3=padw(w3f, hp, hp).astype(f32), b3=padw(b3f, 1, hp).astype(f32),
        w4=padw(w4f, hp, dop).astype(f32), b4=padw(b4f, 1, dop).astype(f32),
        pack=pack, dp=dp, hp=hp, dop=dop, din=din, dout=dout)


# --------------------------------------------------------------------------- #
# Instance-tile selection (prefers no-copy options)
# --------------------------------------------------------------------------- #
def _choose_tile_ng(ng, tile_b, dp, itemsize):
    # (a) single full-N tile if it fits the budget: no padding, no k-loop.
    if tile_b * ng * dp * itemsize <= FULL_N_TILE_BYTES:
        return ng, ng
    # (b) largest multiple-of-8 divisor of ng: no padding, pipelined k-loop.
    cap = min(MAX_TILE_NG, ng)
    for t in range(cap - cap % 8, 7, -8):
        if ng % t == 0:
            return t, ng
    # (c) fallback: pad the group axis (one extra copy of x).
    t = min(MAX_TILE_NG, max(8, _round_up(ng, 8)))
    t = t - t % 8
    return t, _round_up(ng, t)


# --------------------------------------------------------------------------- #
# Forward wrapper
# --------------------------------------------------------------------------- #
def mlpmil_forward(x, kp):
    B, N, din = x.shape
    assert din == kp["din"]
    pack, dp, hp, dop = kp["pack"], kp["dp"], kp["hp"], kp["dop"]

    # Lane-pack instances: (B, N, din) -> (B, NG, pack*din); zero instances
    # contribute nothing to the pooled sum (1/N folding uses the true N).
    n_pad = _round_up(N, pack)
    if n_pad != N:
        x = jnp.pad(x, ((0, 0), (0, n_pad - N), (0, 0)))
    ng = n_pad // pack
    xg = x.reshape(B, ng, pack * din)
    if pack * din != dp:
        xg = jnp.pad(xg, ((0, 0), (0, 0), (0, dp - pack * din)))

    # Batch tile: multiple of 8 (sublane) or the full batch.
    tile_b = min(B, MAX_TILE_B)
    if B % tile_b != 0 or tile_b % 8 != 0:
        tile_b = B

    itemsize = jnp.dtype(xg.dtype).itemsize
    tile_ng, ng_pad = _choose_tile_ng(ng, tile_b, dp, itemsize)
    if ng_pad != ng:
        xg = jnp.pad(xg, ((0, 0), (0, ng_pad - ng), (0, 0)))

    grid = (B // tile_b, ng_pad // tile_ng)

    x_spec = pl.BlockSpec((tile_b, tile_ng, dp), lambda b, k: (b, k, 0))

    def resident(shape):
        return pl.BlockSpec(shape, lambda b, k: (0, 0))

    in_specs = [
        x_spec,
        resident((dp, hp)), resident((1, hp)),
        resident((hp, hp)), resident((1, hp)),
        resident((hp, hp)), resident((1, hp)),
        resident((hp, dop)), resident((1, dop)),
    ]
    out_spec = pl.BlockSpec((tile_b, dop), lambda b, k: (b, 0))

    # VMEM budget: double-buffered x tile + resident weights + accumulator.
    x_tile_bytes = tile_b * tile_ng * dp * itemsize
    w_bytes = 4 * (dp * hp + 2 * hp * hp + hp * dop + 3 * hp + dop)
    acc_bytes = tile_b * dp * 4
    out_bytes = tile_b * dop * 4
    est = 2 * x_tile_bytes + 2 * w_bytes + acc_bytes + 2 * out_bytes + (4 << 20)
    vmem_limit = int(min(max(est, 32 << 20), 48 << 20))

    out = pl.pallas_call(
        _mlpmil_kernel,
        out_shape=jax.ShapeDtypeStruct((B, dop), jnp.float32),
        grid_spec=pltpu.PrefetchScalarGridSpec(
            num_scalar_prefetch=0,
            grid=grid,
            in_specs=in_specs,
            out_specs=out_spec,
            scratch_shapes=[pltpu.VMEM((tile_b, dp), jnp.float32)]),
        compiler_params=pltpu.CompilerParams(
            dimension_semantics=("parallel", "arbitrary"),
            vmem_limit_bytes=vmem_limit),
    )(xg, kp["w1"], kp["b1"], kp["w2"], kp["b2"], kp["w3"], kp["b3"],
      kp["w4"], kp["b4"])

    return out[:, :kp["dout"]]


# --------------------------------------------------------------------------- #
# Synthetic parameters + pure-JAX reference of the original module (eval mode)
# --------------------------------------------------------------------------- #
def make_params(key, input_dim, hidden_dim, output_dim):
    ks = jax.random.split(key, 20)

    def lin(kw, kb, fi, fo):
        bound = 1.0 / jnp.sqrt(fi)
        w = jax.random.uniform(kw, (fi, fo), jnp.float32, -bound, bound)
        b = jax.random.uniform(kb, (1, fo), jnp.float32, -bound, bound)
        return w, b

    def bn(kg, kb, km, kv, d):
        g = 1.0 + 0.1 * jax.random.normal(kg, (1, d), jnp.float32)
        be = 0.1 * jax.random.normal(kb, (1, d), jnp.float32)
        m = 0.1 * jax.random.normal(km, (1, d), jnp.float32)
        v = 1.0 + 0.1 * jax.random.uniform(kv, (1, d), jnp.float32)
        return g, be, m, v

    w1, b1 = lin(ks[0], ks[1], input_dim, hidden_dim)
    g1, be1, m1, v1 = bn(ks[2], ks[3], ks[4], ks[5], hidden_dim)
    w2, b2 = lin(ks[6], ks[7], hidden_dim, hidden_dim)
    g2, be2, m2, v2 = bn(ks[8], ks[9], ks[10], ks[11], hidden_dim)
    w3, b3 = lin(ks[12], ks[13], hidden_dim, hidden_dim)
    g3, be3, m3, v3 = bn(ks[14], ks[15], ks[16], ks[17], hidden_dim)
    w4, b4 = lin(ks[18], ks[19], hidden_dim, output_dim)
    return dict(w1=w1, b1=b1, g1=g1, be1=be1, m1=m1, v1=v1,
                w2=w2, b2=b2, g2=g2, be2=be2, m2=m2, v2=v2,
                w3=w3, b3=b3, g3=g3, be3=be3, m3=m3, v3=v3,
                w4=w4, b4=b4)


def reference_forward(x, p, eps=1e-5):
    def block(h, w, b, g, be, m, v):
        h = jnp.maximum(h @ w + b, 0.0)
        return g * (h - m) / jnp.sqrt(v + eps) + be

    h = jnp.mean(x, axis=1)
    h = block(h, p["w1"], p["b1"], p["g1"], p["be1"], p["m1"], p["v1"])
    h = block(h, p["w2"], p["b2"], p["g2"], p["be2"], p["m2"], p["v2"])
    h = block(h, p["w3"], p["b3"], p["g3"], p["be3"], p["m3"], p["v3"])
    return h @ p["w4"] + p["b4"]                      # Dropout = identity (eval)


if __name__ == "__main__":
    B, N, INPUT_DIM, HIDDEN_DIM, OUTPUT_DIM = 8, 1040, 32, 32, 4

    key = jax.random.PRNGKey(0)
    kx, kparam = jax.random.split(key)
    x = jax.random.normal(kx, (B, N, INPUT_DIM), jnp.float32)
    raw_params = make_params(kparam, INPUT_DIM, HIDDEN_DIM, OUTPUT_DIM)

    kernel_params = prepare_params(raw_params, n_instances=N)
    out = mlpmil_forward(x, kernel_params)
    out = jax.block_until_ready(out)

    ref = reference_forward(x, raw_params)
    assert out.shape == (B, OUTPUT_DIM)
    max_err = float(jnp.max(jnp.abs(out - ref)))
    assert jnp.allclose(out, ref, atol=2e-2, rtol=2e-2), f"max abs err {max_err}"

    print("KERNEL_OK")
</pallas_src>

<mosaic_0001>
module attributes {stable_mosaic.version = 11 : i64} {
  func.func @_mlpmil_kernel(%arg0: i32, %arg1: i32, %arg2: memref<8x260x128xf32, #tpu.memory_space<vmem>>, %arg3: memref<128x128xf32, #tpu.memory_space<vmem>>, %arg4: memref<1x128xf32, #tpu.memory_space<vmem>>, %arg5: memref<128x128xf32, #tpu.memory_space<vmem>>, %arg6: memref<1x128xf32, #tpu.memory_space<vmem>>, %arg7: memref<128x128xf32, #tpu.memory_space<vmem>>, %arg8: memref<1x128xf32, #tpu.memory_space<vmem>>, %arg9: memref<128x128xf32, #tpu.memory_space<vmem>>, %arg10: memref<1x128xf32, #tpu.memory_space<vmem>>, %arg11: memref<8x128xf32, #tpu.memory_space<vmem>>, %arg12: memref<8x128xf32, #tpu.memory_space<vmem>>) attributes {dimension_semantics = [#tpu.dimension_semantics<parallel>, #tpu.dimension_semantics<arbitrary>], iteration_bounds = array<i64: 1, 1>, scalar_prefetch = 0 : i64, scratch_operands = 1 : i64, tpu.core_type = #tpu.core_type<tc>, window_params = [{transform_indices = @transform_0, window_bounds = array<i64: 8, 260, 128>}, {pipeline_mode = #tpu.pipeline_mode<synchronous>, transform_indices = @transform_1, window_bounds = array<i64: 128, 128>}, {pipeline_mode = #tpu.pipeline_mode<synchronous>, transform_indices = @transform_2, window_bounds = array<i64: 1, 128>}, {pipeline_mode = #tpu.pipeline_mode<synchronous>, transform_indices = @transform_3, window_bounds = array<i64: 128, 128>}, {pipeline_mode = #tpu.pipeline_mode<synchronous>, transform_indices = @transform_4, window_bounds = array<i64: 1, 128>}, {pipeline_mode = #tpu.pipeline_mode<synchronous>, transform_indices = @transform_5, window_bounds = array<i64: 128, 128>}, {pipeline_mode = #tpu.pipeline_mode<synchronous>, transform_indices = @transform_6, window_bounds = array<i64: 1, 128>}, {pipeline_mode = #tpu.pipeline_mode<synchronous>, transform_indices = @transform_7, window_bounds = array<i64: 128, 128>}, {pipeline_mode = #tpu.pipeline_mode<synchronous>, transform_indices = @transform_8, window_bounds = array<i64: 1, 128>}, {transform_indices = @transform_9, window_bounds = array<i64: 8, 128>}]} {
    %c0_i32 = arith.constant 0 : i32
    %0 = arith.cmpi eq, %arg1, %c0_i32 : i32
    %1 = arith.extui %0 : i1 to i32
    %c0_i32_0 = arith.constant 0 : i32
    %2 = arith.cmpi ne, %1, %c0_i32_0 : i32
    scf.if %2 {
      %cst_9 = arith.constant 0.000000e+00 : f32
      %11 = vector.broadcast %cst_9 : f32 to vector<8x128xf32>
      %c0_10 = arith.constant 0 : index
      %c0_11 = arith.constant 0 : index
      %12 = vector.load %arg12[%c0_10, %c0_11] : memref<8x128xf32, #tpu.memory_space<vmem>>, vector<8x128xf32>
      tpu.vector_store %arg12[%c0_10, %c0_11], %11 {strides = array<i32>} : memref<8x128xf32, #tpu.memory_space<vmem>>, vector<8x128xf32>,
    } else {
    }
    %c0 = arith.constant 0 : index
    %c0_1 = arith.constant 0 : index
    %3 = vector.load %arg12[%c0, %c0_1] : memref<8x128xf32, #tpu.memory_space<vmem>>, vector<8x128xf32>
    %c0_2 = arith.constant 0 : index
    %c0_3 = arith.constant 0 : index
    %c0_4 = arith.constant 0 : index
    %4 = vector.load %arg2[%c0_2, %c0_3, %c0_4] : memref<8x260x128xf32, #tpu.memory_space<vmem>>, vector<8x260x128xf32>
    %cst = arith.constant dense<0.000000e+00> : vector<8x128xf32>
    %5 = vector.multi_reduction <add>, %4, %cst [1] : vector<8x260x128xf32> to vector<8x128xf32>
    %6 = arith.addf %3, %5 : vector<8x128xf32>
    %c0_5 = arith.constant 0 : index
    %c0_6 = arith.constant 0 : index
    %7 = vector.load %arg12[%c0_5, %c0_6] : memref<8x128xf32, #tpu.memory_space<vmem>>, vector<8x128xf32>
    tpu.vector_store %arg12[%c0_5, %c0_6], %6 {strides = array<i32>} : memref<8x128xf32, #tpu.memory_space<vmem>>, vector<8x128xf32>,
    %c0_i32_7 = arith.constant 0 : i32
    %8 = arith.cmpi eq, %arg1, %c0_i32_7 : i32
    %9 = arith.extui %8 : i1 to i32
    %c0_i32_8 = arith.constant 0 : i32
    %10 = arith.cmpi ne, %9, %c0_i32_8 : i32
    scf.if %10 {
      %c0_9 = arith.constant 0 : index
      %c0_10 = arith.constant 0 : index
      %11 = vector.load %arg12[%c0_9, %c0_10] : memref<8x128xf32, #tpu.memory_space<vmem>>, vector<8x128xf32>
      %c0_11 = arith.constant 0 : index
      %c0_12 = arith.constant 0 : index
      %12 = vector.load %arg3[%c0_11, %c0_12] : memref<128x128xf32, #tpu.memory_space<vmem>>, vector<128x128xf32>
      %cst_13 = arith.constant dense<0.000000e+00> : vector<8x128xf32>
      %13 = tpu.matmul %11, %12, %cst_13 {dimension_numbers = #tpu.dot_dimension_numbers<[1], [0], [0], [1], [0, 0, 1, 1], [], []>} : vector<8x128xf32>, vector<128x128xf32>, vector<8x128xf32> -> vector<8x128xf32>
      %c0_14 = arith.constant 0 : index
      %c0_15 = arith.constant 0 : index
      %14 = vector.load %arg4[%c0_14, %c0_15] : memref<1x128xf32, #tpu.memory_space<vmem>>, vector<1x128xf32>
      %15 = vector.broadcast %14 : vector<1x128xf32> to vector<8x128xf32>
      %16 = arith.addf %13, %15 : vector<8x128xf32>
      %cst_16 = arith.constant 0.000000e+00 : f32
      %17 = vector.broadcast %cst_16 : f32 to vector<8x128xf32>
      %18 = arith.maximumf %16, %17 : vector<8x128xf32>
      %c0_17 = arith.constant 0 : index
      %c0_18 = arith.constant 0 : index
      %19 = vector.load %arg5[%c0_17, %c0_18] : memref<128x128xf32, #tpu.memory_space<vmem>>, vector<128x128xf32>
      %cst_19 = arith.constant dense<0.000000e+00> : vector<8x128xf32>
      %20 = tpu.matmul %18, %19, %cst_19 {dimension_numbers = #tpu.dot_dimension_numbers<[1], [0], [0], [1], [0, 0, 1, 1], [], []>} : vector<8x128xf32>, vector<128x128xf32>, vector<8x128xf32> -> vector<8x128xf32>
      %c0_20 = arith.constant 0 : index
      %c0_21 = arith.constant 0 : index
      %21 = vector.load %arg6[%c0_20, %c0_21] : memref<1x128xf32, #tpu.memory_space<vmem>>, vector<1x128xf32>
      %22 = vector.broadcast %21 : vector<1x128xf32> to vector<8x128xf32>
      %23 = arith.addf %20, %22 : vector<8x128xf32>
      %cst_22 = arith.constant 0.000000e+00 : f32
      %24 = vector.broadcast %cst_22 : f32 to vector<8x128xf32>
      %25 = arith.maximumf %23, %24 : vector<8x128xf32>
      %c0_23 = arith.constant 0 : index
      %c0_24 = arith.constant 0 : index
      %26 = vector.load %arg7[%c0_23, %c0_24] : memref<128x128xf32, #tpu.memory_space<vmem>>, vector<128x128xf32>
      %cst_25 = arith.constant dense<0.000000e+00> : vector<8x128xf32>
      %27 = tpu.matmul %25, %26, %cst_25 {dimension_numbers = #tpu.dot_dimension_numbers<[1], [0], [0], [1], [0, 0, 1, 1], [], []>} : vector<8x128xf32>, vector<128x128xf32>, vector<8x128xf32> -> vector<8x128xf32>
      %c0_26 = arith.constant 0 : index
      %c0_27 = arith.constant 0 : index
      %28 = vector.load %arg8[%c0_26, %c0_27] : memref<1x128xf32, #tpu.memory_space<vmem>>, vector<1x128xf32>
      %29 = vector.broadcast %28 : vector<1x128xf32> to vector<8x128xf32>
      %30 = arith.addf %27, %29 : vector<8x128xf32>
      %cst_28 = arith.constant 0.000000e+00 : f32
      %31 = vector.broadcast %cst_28 : f32 to vector<8x128xf32>
      %32 = arith.maximumf %30, %31 : vector<8x128xf32>
      %c0_29 = arith.constant 0 : index
      %c0_30 = arith.constant 0 : index
      %33 = vector.load %arg9[%c0_29, %c0_30] : memref<128x128xf32, #tpu.memory_space<vmem>>, vector<128x128xf32>
      %cst_31 = arith.constant dense<0.000000e+00> : vector<8x128xf32>
      %34 = tpu.matmul %32, %33, %cst_31 {dimension_numbers = #tpu.dot_dimension_numbers<[1], [0], [0], [1], [0, 0, 1, 1], [], []>} : vector<8x128xf32>, vector<128x128xf32>, vector<8x128xf32> -> vector<8x128xf32>
      %c0_32 = arith.constant 0 : index
      %c0_33 = arith.constant 0 : index
      %35 = vector.load %arg10[%c0_32, %c0_33] : memref<1x128xf32, #tpu.memory_space<vmem>>, vector<1x128xf32>
      %36 = vector.broadcast %35 : vector<1x128xf32> to vector<8x128xf32>
      %37 = arith.addf %34, %36 : vector<8x128xf32>
      %c0_34 = arith.constant 0 : index
      %c0_35 = arith.constant 0 : index
      %38 = vector.load %arg11[%c0_34, %c0_35] : memref<8x128xf32, #tpu.memory_space<vmem>>, vector<8x128xf32>
      tpu.vector_store %arg11[%c0_34, %c0_35], %37 {strides = array<i32>} : memref<8x128xf32, #tpu.memory_space<vmem>>, vector<8x128xf32>,
    } else {
    }
    return
  }
  func.func @transform_0(%arg0: i32, %arg1: i32) -> (i32, i32, i32) {
    %c0_i32 = arith.constant 0 : i32
    %c0_i32_0 = arith.constant 0 : i32
    return %arg0, %arg1, %c0_i32 : i32, i32, i32
  }
  func.func @transform_1(%arg0: i32, %arg1: i32) -> (i32, i32) {
    %c0_i32 = arith.constant 0 : i32
    %c0_i32_0 = arith.constant 0 : i32
    %c0_i32_1 = arith.constant 0 : i32
    return %c0_i32, %c0_i32_0 : i32, i32
  }
  func.func @transform_2(%arg0: i32, %arg1: i32) -> (i32, i32) {
    %c0_i32 = arith.constant 0 : i32
    %c0_i32_0 = arith.constant 0 : i32
    %c0_i32_1 = arith.constant 0 : i32
    return %c0_i32, %c0_i32_0 : i32, i32
  }
  func.func @transform_3(%arg0: i32, %arg1: i32) -> (i32, i32) {
    %c0_i32 = arith.constant 0 : i32
    %c0_i32_0 = arith.constant 0 : i32
    %c0_i32_1 = arith.constant 0 : i32
    return %c0_i32, %c0_i32_0 : i32, i32
  }
  func.func @transform_4(%arg0: i32, %arg1: i32) -> (i32, i32) {
    %c0_i32 = arith.constant 0 : i32
    %c0_i32_0 = arith.constant 0 : i32
    %c0_i32_1 = arith.constant 0 : i32
    return %c0_i32, %c0_i32_0 : i32, i32
  }
  func.func @transform_5(%arg0: i32, %arg1: i32) -> (i32, i32) {
    %c0_i32 = arith.constant 0 : i32
    %c0_i32_0 = arith.constant 0 : i32
    %c0_i32_1 = arith.constant 0 : i32
    return %c0_i32, %c0_i32_0 : i32, i32
  }
  func.func @transform_6(%arg0: i32, %arg1: i32) -> (i32, i32) {
    %c0_i32 = arith.constant 0 : i32
    %c0_i32_0 = arith.constant 0 : i32
    %c0_i32_1 = arith.constant 0 : i32
    return %c0_i32, %c0_i32_0 : i32, i32
  }
  func.func @transform_7(%arg0: i32, %arg1: i32) -> (i32, i32) {
    %c0_i32 = arith.constant 0 : i32
    %c0_i32_0 = arith.constant 0 : i32
    %c0_i32_1 = arith.constant 0 : i32
    return %c0_i32, %c0_i32_0 : i32, i32
  }
  func.func @transform_8(%arg0: i32, %arg1: i32) -> (i32, i32) {
    %c0_i32 = arith.constant 0 : i32
    %c0_i32_0 = arith.constant 0 : i32
    %c0_i32_1 = arith.constant 0 : i32
    return %c0_i32, %c0_i32_0 : i32, i32
  }
  func.func @transform_9(%arg0: i32, %arg1: i32) -> (i32, i32) {
    %c0_i32 = arith.constant 0 : i32
    %c0_i32_0 = arith.constant 0 : i32
    return %arg0, %c0_i32 : i32, i32
  }
}

</mosaic_0001>

<bundles_post_ra>
// kernel: tpu_custom_call.1
= control target key start
LH: loop header
LB: loop body
LE: loop exit
PB: predicated region body
PF: predicated region fallthrough
CT: control target
= control target key end

     0   :  { %v1371_v3 = vmov 0.0|0.0   ;;  %vm1372_vm0 = vmmov 0   ;;  %v1373_v6 = vmov 0.0   ;;  %s2481_s0 = inlined_call_operand.vmem [shape: f32[8,260,128], index: 0, kind: input, shape index: {}]   ;;  %s2482_s1 = inlined_call_operand.vmem [shape: f32[128,128], index: 1, kind: input, shape index: {}]   ;;  %s2483_s2 = inlined_call_operand.vmem [shape: f32[1,128], index: 2, kind: input, shape index: {}]   ;;  %s2484_s3 = inlined_call_operand.vmem [shape: f32[128,128], index: 3, kind: input, shape index: {}]   ;;  %s2485_s4 = inlined_call_operand.vmem [shape: f32[1,128], index: 4, kind: input, shape index: {}]   ;;  %s2486_s5 = inlined_call_operand.vmem [shape: f32[128,128], index: 5, kind: input, shape index: {}]   ;;  %s2487_s6 = inlined_call_operand.vmem [shape: f32[1,128], index: 6, kind: input, shape index: {}]   ;;  %s2488_s7 = inlined_call_operand.vmem [shape: f32[128,128], index: 7, kind: input, shape index: {}]   ;;  %s2489_s8 = inlined_call_operand.vmem [shape: f32[1,128], index: 8, kind: input, shape index: {}]   ;;  %s2490_s9 = inlined_call_operand.hbm [shape: f32[8,128], index: 9, kind: output, shape index: {}]  }
   0x1   :  { %v645_v0 = vld [vmem:[%s2482_s1] sm:$0xff]  ;;  %v646_v1 = vld [vmem:[%s2482_s1 + $0x8] sm:$0xff]  ;;  %v647_v2 = vld [vmem:[%s2482_s1 + $0x10] sm:$0xff]  ;;  %1247 = vmatprep.subr.bf16.mxu0 %v1371_v3  ;;  %1139 = vmatprep.mubr.msk.f32.mxu0 %vm1372_vm0, %v1373_v6 }
   0x2   :  { %v1248_v4 = vpack.c.bf16 %v646_v1, %v645_v0  ;;  %v648_v5 = vld [vmem:[%s2482_s1 + $0x18] sm:$0xff]  ;;  %1271 = vmatprep.subr.bf16.mxu1 %v1371_v3  ;;  %1174 = vmatprep.mubr.msk.f32.mxu1 %vm1372_vm0, %v1373_v6  ;;  %v649_v8 = vld [vmem:[%s2482_s1 + $0x20] sm:$0xff]  ;;  %v650_v9 = vld [vmem:[%s2482_s1 + $0x28] sm:$0xff] }
   0x3   :  { %v1251_v7 = vpack.c.bf16 %v648_v5, %v647_v2  ;;  %v39_v10 = vld [vmem:[%s2481_s0] sm:$0xff]  ;;  %v40_v11 = vld [vmem:[%s2481_s0 + $0x8] sm:$0xff]  ;;  %v41_v12 = vld [vmem:[%s2481_s0 + $0x10] sm:$0xff]  ;;  %v1254_v14 = vpack.c.bf16 %v650_v9, %v649_v8 }
   0x4   :  { %1249 = vmatpush3.bf16.msra.mxu0 %v1248_v4  ;;  %v303_v13 = vadd.f32 %v40_v11, %v39_v10  ;;  %v42_v15 = vld [vmem:[%s2481_s0 + $0x18] sm:$0xff]  ;;  %v651_v16 = vld [vmem:[%s2482_s1 + $0x30] sm:$0xff]  ;;  %v43_v19 = vld [vmem:[%s2481_s0 + $0x20] sm:$0xff] }
   0x5   :  { %1250 = vmatprep.subr.bf16.mxu0 %v1371_v3  ;;  %v652_v17 = vld [vmem:[%s2482_s1 + $0x38] sm:$0xff]  ;;  %v44_v22 = vld [vmem:[%s2481_s0 + $0x28] sm:$0xff]  ;;  %v653_v23 = vld [vmem:[%s2482_s1 + $0x40] sm:$0xff] }
   0x6   :  { %v304_v18 = vadd.f32 %v303_v13, %v41_v12  ;;  %v1257_v21 = vpack.c.bf16 %v652_v17, %v651_v16  ;;  %v654_v24 = vld [vmem:[%s2482_s1 + $0x48] sm:$0xff]  ;;  %v45_v26 = vld [vmem:[%s2481_s0 + $0x30] sm:$0xff]  ;;  %v46_v30 = vld [vmem:[%s2481_s0 + $0x38] sm:$0xff] }
   0x7   :  { %v1260_v28 = vpack.c.bf16 %v654_v24, %v653_v23  ;;  %v655_v29 = vld [vmem:[%s2482_s1 + $0x50] sm:$0xff]  ;;  %v656_v31 = vld [vmem:[%s2482_s1 + $0x58] sm:$0xff]  ;;  %v72_v32 = vld [vmem:[%s2481_s0 + $0x108] sm:$0xff] }
   0x8   :  { %1252 = vmatpush3.bf16.msra.mxu0 %v1251_v7  ;;  %v305_v20 = vadd.f32 %v304_v18, %v42_v15  ;;  %v73_v33 = vld [vmem:[%s2481_s0 + $0x110] sm:$0xff]  ;;  %v47_v35 = vld [vmem:[%s2481_s0 + $0x40] sm:$0xff]  ;;  %v74_v36 = vld [vmem:[%s2481_s0 + $0x118] sm:$0xff]  ;;  %v1263_v40 = vpack.c.bf16 %v656_v31, %v655_v29 }
   0x9   :  { %1253 = vmatprep.subr.bf16.mxu0 %v1371_v3  ;;  %v343_v37 = vadd.f32 %v73_v33, %v72_v32  ;;  %v75_v38 = vld [vmem:[%s2481_s0 + $0x120] sm:$0xff]  ;;  %v48_v41 = vld [vmem:[%s2481_s0 + $0x48] sm:$0xff]  ;;  %v77_v48 = vld [vmem:[%s2481_s0 + $0x130] sm:$0xff] }
   0xa   :  { %v306_v25 = vadd.f32 %v305_v20, %v43_v19  ;;  %v657_v43 = vld [vmem:[%s2482_s1 + $0x60] sm:$0xff]  ;;  %v658_v44 = vld [vmem:[%s2482_s1 + $0x68] sm:$0xff]  ;;  %v49_v51 = vld [vmem:[%s2481_s0 + $0x50] sm:$0xff] }
   0xb   :  { %v344_v42 = vadd.f32 %v343_v37, %v74_v36  ;;  %v76_v45 = vld [vmem:[%s2481_s0 + $0x128] sm:$0xff]  ;;  %v1266_v50 = vpack.c.bf16 %v658_v44, %v657_v43  ;;  %v659_v53 = vld [vmem:[%s2482_s1 + $0x70] sm:$0xff]  ;;  %v660_v54 = vld [vmem:[%s2482_s1 + $0x78] sm:$0xff] }
   0xc   :  { %1255 = vmatpush3.bf16.msra.mxu0 %v1254_v14  ;;  %v307_v27 = vadd.f32 %v306_v25, %v44_v22  ;;  %v78_v55 = vld [vmem:[%s2481_s0 + $0x138] sm:$0xff]  ;;  %v79_v57 = vld [vmem:[%s2481_s0 + $0x140] sm:$0xff]  ;;  %v1269_v59 = vpack.c.bf16 %v660_v54, %v659_v53  ;;  %v105_v61 = vld [vmem:[%s2481_s0 + $0x210] sm:$0xff] }
   0xd   :  { %1256 = vmatprep.subr.bf16.mxu0 %v1371_v3  ;;  %v345_v47 = vadd.f32 %v344_v42, %v75_v38  ;;  %v50_v60 = vld [vmem:[%s2481_s0 + $0x58] sm:$0xff]  ;;  %v80_v0 = vld [vmem:[%s2481_s0 + $0x148] sm:$0xff]  ;;  %v107_v1 = vld [vmem:[%s2481_s0 + $0x220] sm:$0xff] }
   0xe   :  { %v308_v34 = vadd.f32 %v307_v27, %v45_v26  ;;  %v106_v62 = vld [vmem:[%s2481_s0 + $0x218] sm:$0xff]  ;;  %v108_v4 = vld [vmem:[%s2481_s0 + $0x228] sm:$0xff]  ;;  %v81_v7 = vld [vmem:[%s2481_s0 + $0x150] sm:$0xff] }
   0xf   :  { %v346_v52 = vadd.f32 %v345_v47, %v76_v45  ;;  %v382_v2 = vadd.f32 %v106_v62, %v105_v61  ;;  %v51_v10 = vld [vmem:[%s2481_s0 + $0x60] sm:$0xff]  ;;  %v109_v11 = vld [vmem:[%s2481_s0 + $0x230] sm:$0xff]  ;;  %v82_v13 = vld [vmem:[%s2481_s0 + $0x158] sm:$0xff] }
  0x10   :  { %1258 = vmatpush3.bf16.msra.mxu0 %v1257_v21  ;;  %v309_v39 = vadd.f32 %v308_v34, %v46_v30  ;;  %v110_v15 = vld [vmem:[%s2481_s0 + $0x238] sm:$0xff]  ;;  %v83_v17 = vld [vmem:[%s2481_s0 + $0x160] sm:$0xff]  ;;  %v52_v20 = vld [vmem:[%s2481_s0 + $0x68] sm:$0xff] }
  0x11   :  { %1259 = vmatprep.subr.bf16.mxu0 %v1371_v3  ;;  %v347_v56 = vadd.f32 %v346_v52, %v77_v48  ;;  %v383_v9 = vadd.f32 %v382_v2, %v107_v1  ;;  %v111_v21 = vld [vmem:[%s2481_s0 + $0x240] sm:$0xff]  ;;  %v84_v23 = vld [vmem:[%s2481_s0 + $0x168] sm:$0xff]  ;;  %v85_v27 = vld [vmem:[%s2481_s0 + $0x170] sm:$0xff] }
  0x12   :  { %v310_v46 = vadd.f32 %v309_v39, %v47_v35  ;;  %v112_v25 = vld [vmem:[%s2481_s0 + $0x248] sm:$0xff]  ;;  %v139_v29 = vld [vmem:[%s2481_s0 + $0x320] sm:$0xff]  ;;  %v53_v32 = vld [vmem:[%s2481_s0 + $0x70] sm:$0xff] }
  0x13   :  { %v348_v63 = vadd.f32 %v347_v56, %v78_v55  ;;  %v384_v14 = vadd.f32 %v383_v9, %v108_v4  ;;  %v113_v33 = vld [vmem:[%s2481_s0 + $0x250] sm:$0xff]  ;;  %v140_v34 = vld [vmem:[%s2481_s0 + $0x328] sm:$0xff]  ;;  %v86_v37 = vld [vmem:[%s2481_s0 + $0x178] sm:$0xff] }
  0x14   :  { %1261 = vmatpush3.bf16.msra.mxu0 %v1260_v28  ;;  %v311_v49 = vadd.f32 %v310_v46, %v48_v41  ;;  %v138_v28 = vld [vmem:[%s2481_s0 + $0x318] sm:$0xff]  ;;  %v141_v38 = vld [vmem:[%s2481_s0 + $0x330] sm:$0xff]  ;;  %v87_v47 = vld [vmem:[%s2481_s0 + $0x180] sm:$0xff] }
  0x15   :  { %1262 = vmatprep.subr.bf16.mxu0 %v1371_v3  ;;  %v349_v5 = vadd.f32 %v348_v63, %v79_v57  ;;  %v385_v19 = vadd.f32 %v384_v14, %v109_v11  ;;  %v421_v36 = vadd.f32 %v139_v29, %v138_v28  ;;  %v142_v43 = vld [vmem:[%s2481_s0 + $0x338] sm:$0xff]  ;;  %v115_v48 = vld [vmem:[%s2481_s0 + $0x260] sm:$0xff]  ;;  %v116_v53 = vld [vmem:[%s2481_s0 + $0x268] sm:$0xff] }
  0x16   :  { %v312_v58 = vadd.f32 %v311_v49, %v49_v51  ;;  %v54_v46 = vld [vmem:[%s2481_s0 + $0x78] sm:$0xff]  ;;  %v143_v51 = vld [vmem:[%s2481_s0 + $0x340] sm:$0xff]  ;;  %v144_v55 = vld [vmem:[%s2481_s0 + $0x348] sm:$0xff] }
  0x17   :  { %v350_v12 = vadd.f32 %v349_v5, %v80_v0  ;;  %v386_v24 = vadd.f32 %v385_v19, %v110_v15  ;;  %v422_v42 = vadd.f32 %v421_v36, %v140_v34  ;;  %v117_v61 = vld [vmem:[%s2481_s0 + $0x270] sm:$0xff]  ;;  %v118_v1 = vld [vmem:[%s2481_s0 + $0x278] sm:$0xff]  ;;  %v171_v2 = vld [vmem:[%s2481_s0 + $0x420] sm:$0xff] }
  0x18   :  { %1264 = vmatpush3.bf16.msra.mxu0 %v1263_v40  ;;  %v313_v8 = vadd.f32 %v312_v58, %v50_v60  ;;  %v114_v40 = vld [vmem:[%s2481_s0 + $0x258] sm:$0xff]  ;;  %v88_v60 = vld [vmem:[%s2481_s0 + $0x188] sm:$0xff]  ;;  %v145_v63 = vld [vmem:[%s2481_s0 + $0x350] sm:$0xff] }
  0x19   :  { %1265 = vmatprep.subr.bf16.mxu0 %v1371_v3  ;;  %v351_v16 = vadd.f32 %v350_v12, %v81_v7  ;;  %v387_v31 = vadd.f32 %v386_v24, %v111_v21  ;;  %v172_v4 = vld [vmem:[%s2481_s0 + $0x428] sm:$0xff]  ;;  %v173_v9 = vld [vmem:[%s2481_s0 + $0x430] sm:$0xff]  ;;  %v119_v15 = vld [vmem:[%s2481_s0 + $0x280] sm:$0xff] }
  0x1a   :  { %v314_v18 = vadd.f32 %v313_v8, %v51_v10  ;;  %v56_v7 = vld [vmem:[%s2481_s0 + $0x88] sm:$0xff]  ;;  %v146_v8 = vld [vmem:[%s2481_s0 + $0x358] sm:$0xff]  ;;  %v89_v14 = vld [vmem:[%s2481_s0 + $0x190] sm:$0xff] }
  0x1b   :  { %v352_v22 = vadd.f32 %v351_v16, %v82_v13  ;;  %v388_v39 = vadd.f32 %v387_v31, %v112_v25  ;;  %v460_v13 = vadd.f32 %v172_v4, %v171_v2  ;;  %v174_v16 = vld [vmem:[%s2481_s0 + $0x438] sm:$0xff]  ;;  %v120_v21 = vld [vmem:[%s2481_s0 + $0x288] sm:$0xff]  ;;  %v57_v24 = vld [vmem:[%s2481_s0 + $0x90] sm:$0xff] }
  0x1c   :  { %1267 = vmatpush3.bf16.msra.mxu0 %v1266_v50  ;;  %v315_v30 = vadd.f32 %v314_v18, %v52_v20  ;;  %v423_v50 = vadd.f32 %v422_v42, %v141_v38  ;;  %v147_v18 = vld [vmem:[%s2481_s0 + $0x360] sm:$0xff]  ;;  %v148_v25 = vld [vmem:[%s2481_s0 + $0x368] sm:$0xff]  ;;  %v121_v31 = vld [vmem:[%s2481_s0 + $0x290] sm:$0xff] }
  0x1d   :  { %1268 = vmatprep.subr.bf16.mxu0 %v1371_v3  ;;  %v353_v26 = vadd.f32 %v352_v22, %v83_v17  ;;  %v389_v45 = vadd.f32 %v388_v39, %v113_v33  ;;  %v461_v20 = vadd.f32 %v460_v13, %v173_v9  ;;  %v175_v22 = vld [vmem:[%s2481_s0 + $0x440] sm:$0xff]  ;;  %v149_v34 = vld [vmem:[%s2481_s0 + $0x370] sm:$0xff]  ;;  %v92_v4 = vld [vmem:[%s2481_s0 + $0x1a8] sm:$0xff] }
  0x1e   :  { %v316_v44 = vadd.f32 %v315_v30, %v53_v32  ;;  %v424_v54 = vadd.f32 %v423_v50, %v142_v43  ;;  %v90_v30 = vld [vmem:[%s2481_s0 + $0x198] sm:$0xff]  ;;  %v176_v32 = vld [vmem:[%s2481_s0 + $0x448] sm:$0xff]  ;;  %v177_v38 = vld [vmem:[%s2481_s0 + $0x450] sm:$0xff] }
  0x1f   :  { %v354_v35 = vadd.f32 %v353_v26, %v84_v23  ;;  %v390_v52 = vadd.f32 %v389_v45, %v114_v40  ;;  %v462_v29 = vadd.f32 %v461_v20, %v174_v16  ;;  %v58_v40 = vld [vmem:[%s2481_s0 + $0x98] sm:$0xff]  ;;  %v151_v50 = vld [vmem:[%s2481_s0 + $0x380] sm:$0xff]  ;;  %v153_v9 = vld [vmem:[%s2481_s0 + $0x390] sm:$0xff] }
  0x20   :  { %1270 = vmatpush3.bf16.msra.mxu0 %v1269_v59  ;;  %v317_v56 = vadd.f32 %v316_v44, %v54_v46  ;;  %v55_v59 = vld [vmem:[%s2481_s0 + $0x80] sm:$0xff]  ;;  %v425_v62 = vadd.f32 %v424_v54, %v143_v51  ;;  %v204_v51 = vld [vmem:[%s2481_s0 + $0x528] sm:$0xff]  ;;  %v125_v16 = vld [vmem:[%s2481_s0 + $0x2b0] sm:$0xff] }
  0x21   :  { %1295 = vmatprep.subr.bf16.mxu0 %v1371_v3  ;;  %v355_v41 = vadd.f32 %v354_v35, %v85_v27  ;;  %v391_v58 = vadd.f32 %v390_v52, %v115_v48  ;;  %v463_v36 = vadd.f32 %v462_v29, %v175_v22  ;;  %v91_v46 = vld [vmem:[%s2481_s0 + $0x1a0] sm:$0xff]  ;;  %v178_v48 = vld [vmem:[%s2481_s0 + $0x458] sm:$0xff]  ;;  %v205_v52 = vld [vmem:[%s2481_s0 + $0x530] sm:$0xff] }
  0x22   :  { %v426_v5 = vadd.f32 %v425_v62, %v144_v55  ;;  %v318_v10 = vadd.f32 %v317_v56, %v55_v59  ;;  %v179_v55 = vld [vmem:[%s2481_s0 + $0x460] sm:$0xff]  ;;  %v206_v56 = vld [vmem:[%s2481_s0 + $0x538] sm:$0xff]  ;;  %v124_v59 = vld [vmem:[%s2481_s0 + $0x2a8] sm:$0xff] }
  0x23   :  { %v356_v49 = vadd.f32 %v355_v41, %v86_v37  ;;  %v392_v0 = vadd.f32 %v391_v58, %v116_v53  ;;  %v122_v37 = vld [vmem:[%s2481_s0 + $0x298] sm:$0xff]  ;;  %v464_v45 = vadd.f32 %v463_v36, %v176_v32  ;;  %v499_v58 = vadd.f32 %v205_v52, %v204_v51  ;;  %v59_v2 = vld [vmem:[%s2481_s0 + $0xa0] sm:$0xff]  ;;  %v60_v22 = vld [vmem:[%s2481_s0 + $0xa8] sm:$0xff] }
  0x24   :  { %v427_v17 = vadd.f32 %v426_v5, %v145_v63  ;;  %v319_v26 = vadd.f32 %v318_v10, %v56_v7  ;;  %v150_v41 = vld [vmem:[%s2481_s0 + $0x378] sm:$0xff]  ;;  %v180_v5 = vld [vmem:[%s2481_s0 + $0x468] sm:$0xff]  ;;  %v183_v32 = vld [vmem:[%s2481_s0 + $0x480] sm:$0xff] }
  0x25   :  { %v357_v57 = vadd.f32 %v356_v49, %v87_v47  ;;  %v393_v12 = vadd.f32 %v392_v0, %v117_v61  ;;  %v123_v47 = vld [vmem:[%s2481_s0 + $0x2a0] sm:$0xff]  ;;  %v465_v54 = vadd.f32 %v464_v45, %v177_v38  ;;  %v208_v10 = vld [vmem:[%s2481_s0 + $0x548] sm:$0xff]  ;;  %v126_v36 = vld [vmem:[%s2481_s0 + $0x2b8] sm:$0xff] }
  0x26   :  { %v428_v23 = vadd.f32 %v427_v17, %v146_v8  ;;  %v320_v42 = vadd.f32 %v319_v26, %v57_v24  ;;  %v207_v61 = vld [vmem:[%s2481_s0 + $0x540] sm:$0xff]  ;;  %v500_v8 = vadd.f32 %v499_v58, %v206_v56  ;;  %v154_v17 = vld [vmem:[%s2481_s0 + $0x398] sm:$0xff]  ;;  %v185_v52 = vld [vmem:[%s2481_s0 + $0x490] sm:$0xff] }
  0x27   :  { %v358_v11 = vadd.f32 %v357_v57, %v88_v60  ;;  %v394_v19 = vadd.f32 %v393_v12, %v118_v1  ;;  %v152_v60 = vld [vmem:[%s2481_s0 + $0x388] sm:$0xff]  ;;  %v466_v1 = vadd.f32 %v465_v54, %v178_v48  ;;  %v181_v12 = vld [vmem:[%s2481_s0 + $0x470] sm:$0xff]  ;;  %v182_v24 = vld [vmem:[%s2481_s0 + $0x478] sm:$0xff] }
  0x28   :  { %v429_v33 = vadd.f32 %v428_v23, %v147_v18  ;;  %v321_v62 = vadd.f32 %v320_v42, %v58_v40  ;;  %v209_v18 = vld [vmem:[%s2481_s0 + $0x550] sm:$0xff]  ;;  %v211_v38 = vld [vmem:[%s2481_s0 + $0x560] sm:$0xff]  ;;  %v184_v42 = vld [vmem:[%s2481_s0 + $0x488] sm:$0xff] }
  0x29   :  { %v359_v27 = vadd.f32 %v358_v11, %v89_v14  ;;  %v395_v28 = vadd.f32 %v394_v19, %v119_v15  ;;  %v467_v11 = vadd.f32 %v466_v1, %v179_v55  ;;  %v501_v15 = vadd.f32 %v500_v8, %v207_v61  ;;  %v93_v23 = vld [vmem:[%s2481_s0 + $0x1b0] sm:$0xff]  ;;  %v212_v48 = vld [vmem:[%s2481_s0 + $0x568] sm:$0xff]  ;;  %v127_v51 = vld [vmem:[%s2481_s0 + $0x2c0] sm:$0xff] }
  0x2a   :  { %v430_v39 = vadd.f32 %v429_v33, %v148_v25  ;;  %v322_v19 = vadd.f32 %v321_v62, %v59_v2  ;;  %v213_v58 = vld [vmem:[%s2481_s0 + $0x570] sm:$0xff]  ;;  %v186_v1 = vld [vmem:[%s2481_s0 + $0x498] sm:$0xff] }
  0x2b   :  { %v396_v35 = vadd.f32 %v395_v28, %v120_v21  ;;  %v360_v43 = vadd.f32 %v359_v27, %v90_v30  ;;  %v468_v21 = vadd.f32 %v467_v11, %v180_v5  ;;  %v502_v26 = vadd.f32 %v501_v15, %v208_v10  ;;  %v155_v27 = vld [vmem:[%s2481_s0 + $0x3a0] sm:$0xff]  ;;  %v210_v28 = vld [vmem:[%s2481_s0 + $0x558] sm:$0xff]  ;;  %v61_v30 = vld [vmem:[%s2481_s0 + $0xb0] sm:$0xff] }
  0x2c   :  { %v431_v49 = vadd.f32 %v430_v39, %v149_v34  ;;  %v323_v39 = vadd.f32 %v322_v19, %v60_v22  ;;  %v214_v8 = vld [vmem:[%s2481_s0 + $0x578] sm:$0xff]  ;;  %v128_v11 = vld [vmem:[%s2481_s0 + $0x2c8] sm:$0xff] }
  0x2d   :  { %v397_v44 = vadd.f32 %v396_v35, %v121_v31  ;;  %v361_v63 = vadd.f32 %v360_v43, %v91_v46  ;;  %v469_v29 = vadd.f32 %v468_v21, %v181_v12  ;;  %v94_v31 = vld [vmem:[%s2481_s0 + $0x1b8] sm:$0xff]  ;;  %v503_v35 = vadd.f32 %v502_v26, %v209_v18  ;;  %v237_v43 = vld [vmem:[%s2481_s0 + $0x630] sm:$0xff]  ;;  %v187_v12 = vld [vmem:[%s2481_s0 + $0x4a0] sm:$0xff] }
  0x2e   :  { %v432_v57 = vadd.f32 %v431_v49, %v150_v41  ;;  %v239_v49 = vld [vmem:[%s2481_s0 + $0x640] sm:$0xff]  ;;  %v242_v19 = vld [vmem:[%s2481_s0 + $0x658] sm:$0xff] }
  0x2f   :  { %v398_v53 = vadd.f32 %v397_v44, %v122_v37  ;;  %v362_v20 = vadd.f32 %v361_v63, %v92_v4  ;;  %v156_v37 = vld [vmem:[%s2481_s0 + $0x3a8] sm:$0xff]  ;;  %v470_v41 = vadd.f32 %v469_v29, %v182_v24  ;;  %v238_v44 = vld [vmem:[%s2481_s0 + $0x638] sm:$0xff]  ;;  %v504_v46 = vadd.f32 %v503_v35, %v210_v28  ;;  %v215_v18 = vld [vmem:[%s2481_s0 + $0x580] sm:$0xff] }
  0x30   :  { %v433_v7 = vadd.f32 %v432_v57, %v151_v50  ;;  %v538_v56 = vadd.f32 %v238_v44, %v237_v43  ;;  %v158_v57 = vld [vmem:[%s2481_s0 + $0x3b8] sm:$0xff]  ;;  %v96_v24 = vld [vmem:[%s2481_s0 + $0x1c8] sm:$0xff]  ;;  %v129_v29 = vld [vmem:[%s2481_s0 + $0x2d0] sm:$0xff] }
  0x31   :  { %v399_v0 = vadd.f32 %v398_v53, %v123_v47  ;;  %v363_v40 = vadd.f32 %v362_v20, %v93_v23  ;;  %v157_v47 = vld [vmem:[%s2481_s0 + $0x3b0] sm:$0xff]  ;;  %v471_v50 = vadd.f32 %v470_v41, %v183_v32  ;;  %v505_v55 = vadd.f32 %v504_v46, %v211_v38  ;;  %v62_v63 = vld [vmem:[%s2481_s0 + $0xb8] sm:$0xff]  ;;  %v63_v23 = vld [vmem:[%s2481_s0 + $0xc0] sm:$0xff] }
  0x32   :  { %v434_v14 = vadd.f32 %v433_v7, %v152_v60  ;;  %v324_v60 = vadd.f32 %v323_v39, %v61_v30  ;;  %v539_v5 = vadd.f32 %v538_v56, %v239_v49  ;;  %v159_v7 = vld [vmem:[%s2481_s0 + $0x3c0] sm:$0xff]  ;;  %v216_v30 = vld [vmem:[%s2481_s0 + $0x588] sm:$0xff]  ;;  %v189_v35 = vld [vmem:[%s2481_s0 + $0x4b0] sm:$0xff] }
  0x33   :  { %v400_v13 = vadd.f32 %v399_v0, %v124_v59  ;;  %v240_v59 = vld [vmem:[%s2481_s0 + $0x648] sm:$0xff]  ;;  %v364_v61 = vadd.f32 %v363_v40, %v94_v31  ;;  %v472_v62 = vadd.f32 %v471_v50, %v184_v42  ;;  %v95_v0 = vld [vmem:[%s2481_s0 + $0x1c0] sm:$0xff]  ;;  %v506_v4 = vadd.f32 %v505_v55, %v212_v48  ;;  %v270_v42 = vld [vmem:[%s2481_s0 + $0x738] sm:$0xff] }
  0x34   :  { %v435_v25 = vadd.f32 %v434_v14, %v153_v9  ;;  %v241_v9 = vld [vmem:[%s2481_s0 + $0x650] sm:$0xff]  ;;  %v325_v20 = vadd.f32 %v324_v60, %v62_v63  ;;  %v243_v31 = vld [vmem:[%s2481_s0 + $0x660] sm:$0xff]  ;;  %v244_v41 = vld [vmem:[%s2481_s0 + $0x668] sm:$0xff] }
  0x35   :  { %v401_v33 = vadd.f32 %v400_v13, %v125_v16  ;;  %v473_v10 = vadd.f32 %v472_v62, %v185_v52  ;;  %v507_v15 = vadd.f32 %v506_v4, %v213_v58  ;;  %v540_v16 = vadd.f32 %v539_v5, %v240_v59  ;;  %v271_v43 = vld [vmem:[%s2481_s0 + $0x740] sm:$0xff]  ;;  %v190_v48 = vld [vmem:[%s2481_s0 + $0x4b8] sm:$0xff]  ;;  %v272_v49 = vld [vmem:[%s2481_s0 + $0x748] sm:$0xff] }
  0x36   :  { %v436_v34 = vadd.f32 %v435_v25, %v154_v17  ;;  %v160_v17 = vld [vmem:[%s2481_s0 + $0x3c8] sm:$0xff]  ;;  %v365_v21 = vadd.f32 %v364_v61, %v95_v0  ;;  %v326_v44 = vadd.f32 %v325_v20, %v63_v23  ;;  %v218_v52 = vld [vmem:[%s2481_s0 + $0x598] sm:$0xff]  ;;  %v577_v56 = vadd.f32 %v271_v43, %v270_v42  ;;  %v191_v59 = vld [vmem:[%s2481_s0 + $0x4c0] sm:$0xff] }
  0x37   :  { %v402_v53 = vadd.f32 %v401_v33, %v126_v36  ;;  %v474_v22 = vadd.f32 %v473_v10, %v186_v1  ;;  %v188_v25 = vld [vmem:[%s2481_s0 + $0x4a8] sm:$0xff]  ;;  %v541_v28 = vadd.f32 %v540_v16, %v241_v9  ;;  %v217_v36 = vld [vmem:[%s2481_s0 + $0x590] sm:$0xff]  ;;  %v162_v58 = vld [vmem:[%s2481_s0 + $0x3d8] sm:$0xff] }
  0x38   :  { %v437_v45 = vadd.f32 %v436_v34, %v155_v27  ;;  %v508_v27 = vadd.f32 %v507_v15, %v214_v8  ;;  %v64_v33 = vld [vmem:[%s2481_s0 + $0xc8] sm:$0xff]  ;;  %v161_v34 = vld [vmem:[%s2481_s0 + $0x3d0] sm:$0xff]  ;;  %v130_v0 = vld [vmem:[%s2481_s0 + $0x2d8] sm:$0xff]  ;;  %v578_v8 = vadd.f32 %v577_v56, %v272_v49 }
  0x39   :  { %v403_v13 = vadd.f32 %v402_v53, %v127_v51  ;;  %v475_v32 = vadd.f32 %v474_v22, %v187_v12  ;;  %v542_v40 = vadd.f32 %v541_v28, %v242_v19  ;;  %v245_v53 = vld [vmem:[%s2481_s0 + $0x670] sm:$0xff]  ;;  %v219_v1 = vld [vmem:[%s2481_s0 + $0x5a0] sm:$0xff]  ;;  %v327_v4 = vadd.f32 %v326_v44, %v64_v33  ;;  %v98_v9 = vld [vmem:[%s2481_s0 + $0x1d8] sm:$0xff] }
  0x3a   :  { %v438_v54 = vadd.f32 %v437_v45, %v156_v37  ;;  %v509_v39 = vadd.f32 %v508_v27, %v215_v18  ;;  %v366_v45 = vadd.f32 %v365_v21, %v96_v24  ;;  %v273_v60 = vld [vmem:[%s2481_s0 + $0x750] sm:$0xff]  ;;  %v192_v10 = vld [vmem:[%s2481_s0 + $0x4c8] sm:$0xff]  ;;  %v247_v15 = vld [vmem:[%s2481_s0 + $0x680] sm:$0xff] }
  0x3b   :  { %v404_v37 = vadd.f32 %v403_v13, %v128_v11  ;;  %v476_v46 = vadd.f32 %v475_v32, %v188_v25  ;;  %v543_v51 = vadd.f32 %v542_v40, %v243_v31  ;;  %v274_v11 = vld [vmem:[%s2481_s0 + $0x758] sm:$0xff]  ;;  %v579_v18 = vadd.f32 %v578_v8, %v273_v60  ;;  %v99_v20 = vld [vmem:[%s2481_s0 + $0x1e0] sm:$0xff]  ;;  %v193_v22 = vld [vmem:[%s2481_s0 + $0x4d0] sm:$0xff] }
  0x3c   :  { %v439_v2 = vadd.f32 %v438_v54, %v157_v47  ;;  %v97_v47 = vld [vmem:[%s2481_s0 + $0x1d0] sm:$0xff]  ;;  %v510_v50 = vadd.f32 %v509_v39, %v216_v30  ;;  %v66_v19 = vld [vmem:[%s2481_s0 + $0xd8] sm:$0xff]  ;;  %v163_v21 = vld [vmem:[%s2481_s0 + $0x3e0] sm:$0xff] }
  0x3d   :  { %v477_v55 = vadd.f32 %v476_v46, %v189_v35  ;;  %v405_v61 = vadd.f32 %v404_v37, %v129_v29  ;;  %v544_v63 = vadd.f32 %v543_v51, %v244_v41  ;;  %v367_v5 = vadd.f32 %v366_v45, %v97_v47  ;;  %v275_v23 = vld [vmem:[%s2481_s0 + $0x760] sm:$0xff]  ;;  %v221_v28 = vld [vmem:[%s2481_s0 + $0x5b0] sm:$0xff]  ;;  %v248_v29 = vld [vmem:[%s2481_s0 + $0x688] sm:$0xff] }
  0x3e   :  { %v440_v14 = vadd.f32 %v439_v2, %v158_v57  ;;  %v65_v57 = vld [vmem:[%s2481_s0 + $0xd0] sm:$0xff]  ;;  %v511_v62 = vadd.f32 %v510_v50, %v217_v36  ;;  %v246_v2 = vld [vmem:[%s2481_s0 + $0x678] sm:$0xff]  ;;  %v131_v27 = vld [vmem:[%s2481_s0 + $0x2e0] sm:$0xff]  ;;  %v580_v33 = vadd.f32 %v579_v18, %v274_v11 }
  0x3f   :  { %v545_v13 = vadd.f32 %v544_v63, %v245_v53  ;;  %v406_v24 = vadd.f32 %v405_v61, %v130_v0  ;;  %v328_v30 = vadd.f32 %v327_v4, %v65_v57  ;;  %v368_v31 = vadd.f32 %v367_v5, %v98_v9  ;;  %v194_v35 = vld [vmem:[%s2481_s0 + $0x4d8] sm:$0xff]  ;;  %v195_v36 = vld [vmem:[%s2481_s0 + $0x4e0] sm:$0xff]  ;;  %v276_v37 = vld [vmem:[%s2481_s0 + $0x768] sm:$0xff] }
  0x40   :  { %v441_v26 = vadd.f32 %v440_v14, %v159_v7  ;;  %v478_v7 = vadd.f32 %v477_v55, %v190_v48  ;;  %v512_v12 = vadd.f32 %v511_v62, %v218_v52  ;;  %v220_v14 = vld [vmem:[%s2481_s0 + $0x5a8] sm:$0xff]  ;;  %v222_v41 = vld [vmem:[%s2481_s0 + $0x5b8] sm:$0xff]  ;;  %v223_v42 = vld [vmem:[%s2481_s0 + $0x5c0] sm:$0xff]  ;;  %v581_v46 = vadd.f32 %v580_v33, %v275_v23 }
  0x41   :  { %v132_v40 = vld [vmem:[%s2481_s0 + $0x2e8] sm:$0xff]  ;;  %v249_v43 = vld [vmem:[%s2481_s0 + $0x690] sm:$0xff]  ;;  %v67_v47 = vld [vmem:[%s2481_s0 + $0xe0] sm:$0xff]  ;;  %v407_v50 = vadd.f32 %v406_v24, %v131_v27  ;;  %v329_v56 = vadd.f32 %v328_v30, %v66_v19  ;;  %v369_v57 = vadd.f32 %v368_v31, %v99_v20 }
  0x42   :  { %v442_v38 = vadd.f32 %v441_v26, %v160_v17  ;;  %v479_v17 = vadd.f32 %v478_v7, %v191_v59  ;;  %v513_v25 = vadd.f32 %v512_v12, %v219_v1  ;;  %v546_v26 = vadd.f32 %v545_v13, %v246_v2  ;;  %v100_v48 = vld [vmem:[%s2481_s0 + $0x1e8] sm:$0xff]  ;;  %v277_v49 = vld [vmem:[%s2481_s0 + $0x770] sm:$0xff]  ;;  %v739_v53 = vld [vmem:[%s2484_s3] sm:$0xff] }
  0x43   :  { %v250_v55 = vld [vmem:[%s2481_s0 + $0x698] sm:$0xff]  ;;  %v582_v59 = vadd.f32 %v581_v46, %v276_v37  ;;  %v741_v60 = vld [vmem:[%s2484_s3 + $0x10] sm:$0xff]  ;;  %v196_v63 = vld [vmem:[%s2481_s0 + $0x4e8] sm:$0xff]  ;;  %v330_v20 = vadd.f32 %v329_v56, %v67_v47 }
  0x44   :  { %v443_v54 = vadd.f32 %v442_v38, %v161_v34  ;;  %v480_v32 = vadd.f32 %v479_v17, %v192_v10  ;;  %v164_v34 = vld [vmem:[%s2481_s0 + $0x3e8] sm:$0xff]  ;;  %v514_v38 = vadd.f32 %v513_v25, %v220_v14  ;;  %v547_v39 = vadd.f32 %v546_v26, %v247_v15  ;;  %v742_v61 = vld [vmem:[%s2484_s3 + $0x18] sm:$0xff]  ;;  %v165_v62 = vld [vmem:[%s2481_s0 + $0x3f0] sm:$0xff] }
  0x45   :  { %v278_v0 = vld [vmem:[%s2481_s0 + $0x778] sm:$0xff]  ;;  %v133_v5 = vld [vmem:[%s2481_s0 + $0x2f0] sm:$0xff]  ;;  %v224_v8 = vld [vmem:[%s2481_s0 + $0x5c8] sm:$0xff]  ;;  %v583_v12 = vadd.f32 %v582_v59, %v277_v49  ;;  %v1275_v19 = vpack.c.bf16 %v742_v61, %v741_v60 }
  0x46   :  { %v444_v16 = vadd.f32 %v443_v54, %v162_v58  ;;  %v481_v45 = vadd.f32 %v480_v32, %v193_v22  ;;  %v515_v51 = vadd.f32 %v514_v38, %v221_v28  ;;  %v548_v52 = vadd.f32 %v547_v39, %v248_v29  ;;  %v740_v54 = vld [vmem:[%s2484_s3 + $0x8] sm:$0xff]  ;;  %v197_v7 = vld [vmem:[%s2481_s0 + $0x4f0] sm:$0xff]  ;;  %v251_v9 = vld [vmem:[%s2481_s0 + $0x6a0] sm:$0xff] }
  0x47   :  { %v1272_v4 = vpack.c.bf16 %v740_v54, %v739_v53  ;;  %v225_v13 = vld [vmem:[%s2481_s0 + $0x5d0] sm:$0xff]  ;;  %v252_v14 = vld [vmem:[%s2481_s0 + $0x6a8] sm:$0xff]  ;;  %v279_v15 = vld [vmem:[%s2481_s0 + $0x780] sm:$0xff]  ;;  %v584_v23 = vadd.f32 %v583_v12, %v278_v0 }
  0x48   :  { %v445_v44 = vadd.f32 %v444_v16, %v163_v21  ;;  %v482_v58 = vadd.f32 %v481_v45, %v194_v35  ;;  %v516_v1 = vadd.f32 %v515_v51, %v222_v41  ;;  %v549_v2 = vadd.f32 %v548_v52, %v249_v43  ;;  %v743_v24 = vld [vmem:[%s2484_s3 + $0x20] sm:$0xff]  ;;  %v744_v25 = vld [vmem:[%s2484_s3 + $0x28] sm:$0xff] }
  0x49   :  { %v408_v16 = vadd.f32 %v407_v50, %v132_v40  ;;  %1273 = vmatpush3.bf16.msra.mxu1 %v1272_v4  ;;  %v370_v21 = vadd.f32 %v369_v57, %v100_v48 }
  0x4a   :  { %v446_v10 = vadd.f32 %v445_v44, %v164_v34  ;;  %v483_v11 = vadd.f32 %v482_v58, %v195_v36  ;;  %v517_v17 = vadd.f32 %v516_v1, %v223_v42  ;;  %v550_v18 = vadd.f32 %v549_v2, %v250_v55  ;;  %1274 = vmatprep.subr.bf16.mxu1 %v1371_v3 }
  0x4c   :  { %v484_v22 = vadd.f32 %v483_v11, %v196_v63 }
  0x4d   :  { %14 = vsyncpa [#allocation4], 0  ;;  %v68_v26 = vld [vmem:[%s2481_s0 + $0xe8] sm:$0xff]  ;;  %v101_v27 = vld [vmem:[%s2481_s0 + $0x1f0] sm:$0xff]  ;;  %v518_v29 = vadd.f32 %v517_v17, %v224_v8  ;;  %v551_v30 = vadd.f32 %v550_v18, %v251_v9  ;;  %v447_v35 = vadd.f32 %v446_v10, %v165_v62  ;;  %v585_v37 = vadd.f32 %v584_v23, %v279_v15  ;;  %1276 = vmatpush3.bf16.msra.mxu1 %v1275_v19  ;;  %s1374_s26 = smov [#allocation3]  }
  0x4e   :  { %v280_v28 = vld [vmem:[%s2481_s0 + $0x788] sm:$0xff]  ;;  %v134_v31 = vld [vmem:[%s2481_s0 + $0x2f8] sm:$0xff]  ;;  %v253_v34 = vld [vmem:[%s2481_s0 + $0x6b0] sm:$0xff]  ;;  %v485_v36 = vadd.f32 %v484_v22, %v197_v7  ;;  %v409_v41 = vadd.f32 %v408_v16, %v133_v5  ;;  %v1278_v44 = vpack.c.bf16 %v744_v25, %v743_v24  ;;  %v331_v46 = vadd.f32 %v330_v20, %v68_v26  ;;  %1277 = vmatprep.subr.bf16.mxu1 %v1371_v3 }
  0x4f   :  { %v198_v32 = vld [vmem:[%s2481_s0 + $0x4f8] sm:$0xff]  ;;  %v227_v39 = vld [vmem:[%s2481_s0 + $0x5e0] sm:$0xff]  ;;  %v281_v40 = vld [vmem:[%s2481_s0 + $0x790] sm:$0xff]  ;;  %v519_v42 = vadd.f32 %v518_v29, %v225_v13  ;;  %v552_v43 = vadd.f32 %v551_v30, %v252_v14  ;;  %v371_v47 = vadd.f32 %v370_v21, %v101_v27  ;;  %v586_v48 = vadd.f32 %v585_v37, %v280_v28 }
  0x50   :  { %v226_v33 = vld [vmem:[%s2481_s0 + $0x5d8] sm:$0xff]  ;;  %v745_v49 = vld [vmem:[%s2484_s3 + $0x30] sm:$0xff]  ;;  %v486_v54 = vadd.f32 %v485_v36, %v198_v32  ;;  %v135_v57 = vld [vmem:[%s2481_s0 + $0x300] sm:$0xff]  ;;  %v410_v5 = vadd.f32 %v409_v41, %v134_v31  ;;  %vm334_vm1 = vcmask 1043456   ;;  %vm624_vm2 = vcmask 1041409  }
  0x51   :  { %v166_v38 = vld [vmem:[%s2481_s0 + $0x3f8] sm:$0xff]  ;;  %v69_v51 = vld [vmem:[%s2481_s0 + $0xf0] sm:$0xff]  ;;  %v520_v55 = vadd.f32 %v519_v42, %v226_v33  ;;  %v553_v56 = vadd.f32 %v552_v43, %v253_v34  ;;  %v199_v58 = vld [vmem:[%s2481_s0 + $0x500] sm:$0xff]  ;;  %v587_v62 = vadd.f32 %v586_v48, %v281_v40  ;;  %1279 = vmatpush3.bf16.msra.mxu1 %v1278_v44  ;;  %vm626_vm3 = vcmask 1042434  }
  0x52   :  { %v254_v45 = vld [vmem:[%s2481_s0 + $0x6b8] sm:$0xff]  ;;  %v228_v59 = vld [vmem:[%s2481_s0 + $0x5e8] sm:$0xff]  ;;  %v255_v60 = vld [vmem:[%s2481_s0 + $0x6c0] sm:$0xff]  ;;  %v448_v61 = vadd.f32 %v447_v35, %v166_v38  ;;  %v332_v11 = vadd.f32 %v331_v46, %v69_v51  ;;  %1280 = vmatprep.subr.bf16.mxu1 %v1371_v3  ;;  %v487_v19 = vadd.f32 %v486_v54, %v199_v58  ;;  %v411_v31 = vadd.f32 %v410_v5, %v135_v57 }
  0x53   :  { %v746_v50 = vld [vmem:[%s2484_s3 + $0x38] sm:$0xff]  ;;  %v71_v0 = vld [vmem:[%s2481_s0 + $0x100] sm:$0xf]  ;;  %v229_v2 = vld [vmem:[%s2481_s0 + $0x5f0] sm:$0xff]  ;;  %v521_v7 = vadd.f32 %v520_v55, %v227_v39  ;;  %v554_v8 = vadd.f32 %v553_v56, %v254_v45  ;;  %vm628_vm4 = vcmask 1043459   ;;  %vm630_vm5 = vcmask 1044484  }
  0x54   :  { %v102_v52 = vld [vmem:[%s2481_s0 + $0x1f8] sm:$0xff]  ;;  %v167_v1 = vld [vmem:[%s2481_s0 + $0x400] sm:$0xff]  ;;  %v1281_v9 = vpack.c.bf16 %v746_v50, %v745_v49  ;;  %v256_v10 = vld [vmem:[%s2481_s0 + $0x6c8] sm:$0xff]  ;;  %v335_v37 = vsel %vm334_vm1, %v71_v0, 0.0  ;;  %vm632_vm6 = vcmask 1045509   ;;  %vm634_vm7 = vcmask 1046534  }
  0x55   :  { %v282_v53 = vld [vmem:[%s2481_s0 + $0x798] sm:$0xff]  ;;  %v283_v4 = vld [vmem:[%s2481_s0 + $0x7a0] sm:$0xff]  ;;  %v372_v12 = vadd.f32 %v371_v47, %v102_v52  ;;  %v748_v15 = vld [vmem:[%s2484_s3 + $0x48] sm:$0xff]  ;;  %v522_v20 = vadd.f32 %v521_v7, %v228_v59  ;;  %v555_v21 = vadd.f32 %v554_v8, %v255_v60  ;;  %v449_v26 = vadd.f32 %v448_v61, %v167_v1 }
  0x56   :  { %v70_v63 = vld [vmem:[%s2481_s0 + $0xf8] sm:$0xff]  ;;  %v588_v13 = vadd.f32 %v587_v62, %v282_v53  ;;  %v747_v14 = vld [vmem:[%s2484_s3 + $0x40] sm:$0xff]  ;;  %v104_v17 = vld [vmem:[%s2481_s0 + $0x208] sm:$0xf]  ;;  %1282 = vmatpush3.bf16.msra.mxu1 %v1281_v9  ;;  %vm636_vm8 = vcmask 1047559  }
  0x57   :  { %v103_v16 = vld [vmem:[%s2481_s0 + $0x200] sm:$0xff]  ;;  %v284_v18 = vld [vmem:[%s2481_s0 + $0x7a8] sm:$0xff]  ;;  %v230_v24 = vld [vmem:[%s2481_s0 + $0x5f8] sm:$0xff]  ;;  %v523_v32 = vadd.f32 %v522_v20, %v229_v2  ;;  %v556_v33 = vadd.f32 %v555_v21, %v256_v10  ;;  %v1284_v34 = vpack.c.bf16 %v748_v15, %v747_v14  ;;  %v333_v36 = vadd.f32 %v332_v11, %v70_v63  ;;  %1283 = vmatprep.subr.bf16.mxu1 %v1371_v3 }
  0x58   :  { %v136_v22 = vld [vmem:[%s2481_s0 + $0x308] sm:$0xff]  ;;  %v257_v25 = vld [vmem:[%s2481_s0 + $0x6d0] sm:$0xff]  ;;  %v589_v27 = vadd.f32 %v588_v13, %v283_v4  ;;  %v231_v29 = vld [vmem:[%s2481_s0 + $0x600] sm:$0xff]  ;;  %v373_v38 = vadd.f32 %v372_v12, %v103_v16  ;;  %v374_v45 = vsel %vm334_vm1, %v104_v17, 0.0 }
  0x59   :  { %v200_v23 = vld [vmem:[%s2481_s0 + $0x508] sm:$0xff]  ;;  %v285_v30 = vld [vmem:[%s2481_s0 + $0x7b0] sm:$0xff]  ;;  %v258_v35 = vld [vmem:[%s2481_s0 + $0x6d8] sm:$0xff]  ;;  %v524_v47 = vadd.f32 %v523_v32, %v230_v24  ;;  %v557_v48 = vadd.f32 %v556_v33, %v257_v25  ;;  %v412_v57 = vadd.f32 %v411_v31, %v136_v22  ;;  %v336_v62 = vadd.f32 %v335_v37, %v333_v36 }
  0x5a   :  { %v168_v28 = vld [vmem:[%s2481_s0 + $0x408] sm:$0xff]  ;;  %v590_v39 = vadd.f32 %v589_v27, %v284_v18  ;;  %v749_v40 = vld [vmem:[%s2484_s3 + $0x50] sm:$0xff]  ;;  %v750_v41 = vld [vmem:[%s2484_s3 + $0x58] sm:$0xff]  ;;  %v488_v46 = vadd.f32 %v487_v19, %v200_v23  ;;  %1285 = vmatpush3.bf16.msra.mxu1 %v1284_v34  ;;  %v375_v63 = vadd.f32 %v374_v45, %v373_v38 }
  0x5b   :  { %v137_v42 = vld [vmem:[%s2481_s0 + $0x310] sm:$0xf]  ;;  %v286_v44 = vld [vmem:[%s2481_s0 + $0x7b8] sm:$0xff]  ;;  %v232_v50 = vld [vmem:[%s2481_s0 + $0x608] sm:$0xff]  ;;  %v450_v52 = vadd.f32 %v449_v26, %v168_v28  ;;  %v525_v58 = vadd.f32 %v524_v47, %v231_v29  ;;  %v558_v59 = vadd.f32 %v557_v48, %v258_v35  ;;  %v1287_v60 = vpack.c.bf16 %v750_v41, %v749_v40  ;;  %1286 = vmatprep.subr.bf16.mxu1 %v1371_v3 }
  0x5c   :  { %v169_v43 = vld [vmem:[%s2481_s0 + $0x410] sm:$0xff]  ;;  %v259_v51 = vld [vmem:[%s2481_s0 + $0x6e0] sm:$0xff]  ;;  %v591_v53 = vadd.f32 %v590_v39, %v285_v30  ;;  %v170_v54 = vld [vmem:[%s2481_s0 + $0x418] sm:$0xf]  ;;  %v413_v0 = vsel %vm334_vm1, %v137_v42, 0.0  ;;  %v337_v23 = vrot.slane %v336_v62, 4 }
  0x5d   :  { %v201_v49 = vld [vmem:[%s2481_s0 + $0x510] sm:$0xff]  ;;  %v287_v56 = vld [vmem:[%s2481_s0 + $0x7c0] sm:$0xff]  ;;  %v260_v61 = vld [vmem:[%s2481_s0 + $0x6e8] sm:$0xff]  ;;  %v526_v8 = vadd.f32 %v525_v58, %v232_v50  ;;  %v559_v9 = vadd.f32 %v558_v59, %v259_v51  ;;  %v451_v13 = vadd.f32 %v450_v52, %v169_v43  ;;  %v452_v14 = vsel %vm334_vm1, %v170_v54, 0.0 }
  0x5e   :  { %v233_v55 = vld [vmem:[%s2481_s0 + $0x610] sm:$0xff]  ;;  %v592_v1 = vadd.f32 %v591_v53, %v286_v44  ;;  %v751_v2 = vld [vmem:[%s2484_s3 + $0x60] sm:$0xff]  ;;  %v752_v4 = vld [vmem:[%s2484_s3 + $0x68] sm:$0xff]  ;;  %v489_v7 = vadd.f32 %v488_v46, %v201_v49  ;;  %v414_v18 = vadd.f32 %v413_v0, %v412_v57  ;;  %1288 = vmatpush3.bf16.msra.mxu1 %v1287_v60  ;;  %v376_v24 = vrot.slane %v375_v63, 4 }
  0x5f   :  { %v288_v5 = vld [vmem:[%s2481_s0 + $0x7c8] sm:$0xff]  ;;  %v202_v10 = vld [vmem:[%s2481_s0 + $0x518] sm:$0xff]  ;;  %v261_v12 = vld [vmem:[%s2481_s0 + $0x6f0] sm:$0xff]  ;;  %v527_v19 = vadd.f32 %v526_v8, %v233_v55  ;;  %v560_v20 = vadd.f32 %v559_v9, %v260_v61  ;;  %v1290_v21 = vpack.c.bf16 %v752_v4, %v751_v2  ;;  %1289 = vmatprep.subr.bf16.mxu1 %v1371_v3  ;;  %v453_v33 = vadd.f32 %v452_v14, %v451_v13 }
  0x60   :  { %v234_v11 = vld [vmem:[%s2481_s0 + $0x618] sm:$0xff]  ;;  %v593_v15 = vadd.f32 %v592_v1, %v287_v56  ;;  %v203_v16 = vld [vmem:[%s2481_s0 + $0x520] sm:$0xf]  ;;  %v289_v17 = vld [vmem:[%s2481_s0 + $0x7d0] sm:$0xff]  ;;  %v490_v28 = vadd.f32 %v489_v7, %v202_v10  ;;  %v415_v37 = vrot.slane %v414_v18, 4  ;;  %v338_v40 = vadd.f32 %v337_v23, %v336_v62 }
  0x61   :  { %v262_v22 = vld [vmem:[%s2481_s0 + $0x6f8] sm:$0xff]  ;;  %v235_v26 = vld [vmem:[%s2481_s0 + $0x620] sm:$0xff]  ;;  %v528_v29 = vadd.f32 %v527_v19, %v234_v11  ;;  %v561_v30 = vadd.f32 %v560_v20, %v261_v12  ;;  %v236_v31 = vld [vmem:[%s2481_s0 + $0x628] sm:$0xf]  ;;  %v491_v34 = vsel %vm334_vm1, %v203_v16, 0.0  ;;  %v377_v41 = vadd.f32 %v376_v24, %v375_v63 }
  0x62   :  { %v594_v25 = vadd.f32 %v593_v15, %v288_v5  ;;  %v290_v27 = vld [vmem:[%s2481_s0 + $0x7d8] sm:$0xff]  ;;  %v263_v32 = vld [vmem:[%s2481_s0 + $0x700] sm:$0xff]  ;;  %1291 = vmatpush3.bf16.msra.mxu1 %v1290_v21  ;;  %v264_v39 = vld [vmem:[%s2481_s0 + $0x708] sm:$0xff]  ;;  %v492_v45 = vadd.f32 %v491_v34, %v490_v28  ;;  %v530_v46 = vsel %vm334_vm1, %v236_v31, 0.0  ;;  %v454_v49 = vrot.slane %v453_v33, 4 }
  0x63   :  { %v291_v36 = vld [vmem:[%s2481_s0 + $0x7e0] sm:$0xff]  ;;  %v562_v38 = vadd.f32 %v561_v30, %v262_v22  ;;  %v529_v42 = vadd.f32 %v528_v29, %v235_v26  ;;  %1292 = vmatprep.subr.bf16.mxu1 %v1371_v3  ;;  %v292_v44 = vld [vmem:[%s2481_s0 + $0x7e8] sm:$0xff]  ;;  %v265_v48 = vld [vmem:[%s2481_s0 + $0x710] sm:$0xff]  ;;  %v416_v52 = vadd.f32 %v415_v37, %v414_v18  ;;  %v339_v55 = vrot.slane %v338_v40, 2 }
  0x64   :  { %v595_v35 = vadd.f32 %v594_v25, %v289_v17  ;;  %v293_v51 = vld [vmem:[%s2481_s0 + $0x7f0] sm:$0xff]  ;;  %v266_v54 = vld [vmem:[%s2481_s0 + $0x718] sm:$0xff]  ;;  %v378_v56 = vrot.slane %v377_v41, 2  ;;  %v493_v60 = vrot.slane %v492_v45, 4  ;;  %v267_v62 = vld [vmem:[%s2481_s0 + $0x720] sm:$0xff]  ;;  %v455_v63 = vadd.f32 %v454_v49, %v453_v33 }
  0x65   :  { %v563_v47 = vadd.f32 %v562_v38, %v263_v32  ;;  %v531_v57 = vadd.f32 %v530_v46, %v529_v42  ;;  %v294_v59 = vld [vmem:[%s2481_s0 + $0x7f8] sm:$0xff]  ;;  %v269_v1 = vld [vmem:[%s2481_s0 + $0x730] sm:$0xf]  ;;  %v295_v2 = vld [vmem:[%s2481_s0 + $0x800] sm:$0xff]  ;;  %v417_v4 = vrot.slane %v416_v52, 2  ;;  %v340_v8 = vadd.f32 %v339_v55, %v338_v40 }
  0x66   :  { %v596_v43 = vadd.f32 %v595_v35, %v290_v27  ;;  %v268_v7 = vld [vmem:[%s2481_s0 + $0x728] sm:$0xff]  ;;  %v379_v9 = vadd.f32 %v378_v56, %v377_v41  ;;  %v494_v13 = vadd.f32 %v493_v60, %v492_v45  ;;  %v456_v15 = vrot.slane %v455_v63, 2  ;;  %v297_v18 = vld [vmem:[%s2481_s0 + $0x810] sm:$0xff]  ;;  %v298_v25 = vld [vmem:[%s2481_s0 + $0x818] sm:$0xff] }
  0x67   :  { %v564_v53 = vadd.f32 %v563_v47, %v264_v39  ;;  %v532_v10 = vrot.slane %v531_v57, 4  ;;  %v296_v12 = vld [vmem:[%s2481_s0 + $0x808] sm:$0xff]  ;;  %v569_v16 = vsel %vm334_vm1, %v269_v1, 0.0  ;;  %v418_v19 = vadd.f32 %v417_v4, %v416_v52  ;;  %v299_v30 = vld [vmem:[%s2481_s0 + $0x820] sm:$0xff]  ;;  %v302_v40 = vld [vmem:[%s2481_s0 + $0x838] sm:$0xf] }
  0x68   :  { %v597_v50 = vadd.f32 %v596_v43, %v291_v36  ;;  %v341_v21 = vrot.slane %v340_v8, 1  ;;  %v380_v22 = vrot.slane %v379_v9, 1  ;;  %v495_v26 = vrot.slane %v494_v13, 2  ;;  %v300_v37 = vld [vmem:[%s2481_s0 + $0x828] sm:$0xff]  ;;  %v301_v43 = vld [vmem:[%s2481_s0 + $0x830] sm:$0xff]  ;;  %s1027_s0 = sshll.u32 %s1374_s26, 4  ;;  %s1028_s0 = int_to_ptr.vmem [resolvable:$true] %s1027_s0 }
  0x69   :  { %v565_v61 = vadd.f32 %v564_v53, %v265_v48  ;;  %v533_v23 = vadd.f32 %v532_v10, %v531_v57  ;;  %v457_v28 = vadd.f32 %v456_v15, %v455_v63  ;;  %v419_v31 = vrot.slane %v418_v19, 1  ;;  %v753_v10 = vld [vmem:[%s2484_s3 + $0x70] sm:$0xff]  ;;  %p1352_p1 = scmp.lt.s32.totalorder %s1028_s0, %s1028_s0 }
  0x6a   :  { %v598_v58 = vadd.f32 %v597_v50, %v292_v44  ;;  %v342_v33 = vadd.f32 %v341_v21, %v340_v8  ;;  %v381_v34 = vadd.f32 %v380_v22, %v379_v9  ;;  %v496_v38 = vadd.f32 %v495_v26, %v494_v13  ;;  %v833_v13 = vld [vmem:[%s2486_s5] sm:$0xff]  ;;  %v835_v15 = vld [vmem:[%s2486_s5 + $0x10] sm:$0xff]  ;;  %v842_v26 = vld [vmem:[%s2486_s5 + $0x48] sm:$0xff] }
  0x6b   :  { %v566_v5 = vadd.f32 %v565_v61, %v266_v54  ;;  %v534_v35 = vrot.slane %v533_v23, 2  ;;  %v458_v41 = vrot.slane %v457_v28, 1  ;;  %v420_v44 = vadd.f32 %v419_v31, %v418_v19  ;;  %v837_v19 = vld [vmem:[%s2486_s5 + $0x20] sm:$0xff]  ;;  %v839_v22 = vld [vmem:[%s2486_s5 + $0x30] sm:$0xff] }
  0x6c   :  { %v599_v0 = vadd.f32 %v598_v58, %v293_v51  ;;  %v625_v48 = vsel %vm624_vm2, %v381_v34, %v342_v33  ;;  %v497_v49 = vrot.slane %v496_v38, 1  ;;  %v608_v50 = vsel %vm334_vm1, %v302_v40, 0.0  ;;  %v845_v31 = vld [vmem:[%s2486_s5 + $0x60] sm:$0xff]  ;;  %v848_v40 = vld [vmem:[%s2486_s5 + $0x78] sm:$0xff] }
  0x6d   :  { %v567_v14 = vadd.f32 %v566_v5, %v267_v62  ;;  %v535_v46 = vadd.f32 %v534_v35, %v533_v23  ;;  %v459_v51 = vadd.f32 %v458_v41, %v457_v28  ;;  %v627_v54 = vsel %vm626_vm3, %v420_v44, %v625_v48  ;;  %v840_v23 = vld [vmem:[%s2486_s5 + $0x38] sm:$0xff]  ;;  %v843_v28 = vld [vmem:[%s2486_s5 + $0x50] sm:$0xff]  ;;  %v1035_v34 = vld [vmem:[%s2483_s2] ss:$0 sm:$0xff] }
  0x6e   :  { %v600_v11 = vadd.f32 %v599_v0, %v294_v59  ;;  %v498_v57 = vadd.f32 %v497_v49, %v496_v38  ;;  %v932_v48 = vld [vmem:[%s2488_s7 + $0x28] sm:$0xff] }
  0x6f   :  { %v568_v20 = vadd.f32 %v567_v14, %v268_v7  ;;  %v536_v55 = vrot.slane %v535_v46, 1  ;;  %v629_v59 = vsel %vm628_vm4, %v459_v51, %v627_v54  ;;  %v834_v14 = vld [vmem:[%s2486_s5 + $0x8] sm:$0xff]  ;;  %v934_v51 = vld [vmem:[%s2488_s7 + $0x38] sm:$0xff] }
  0x70   :  { %v601_v17 = vadd.f32 %v600_v11, %v295_v2  ;;  %v631_v63 = vsel %vm630_vm5, %v498_v57, %v629_v59  ;;  %v754_v11 = vld [vmem:[%s2484_s3 + $0x78] sm:$0xff]  ;;  %v936_v54 = vld [vmem:[%s2488_s7 + $0x48] sm:$0xff]  ;;  %v939_v59 = vld [vmem:[%s2488_s7 + $0x60] sm:$0xff] }
  0x71   :  { %v570_v27 = vadd.f32 %v569_v16, %v568_v20  ;;  %v537_v61 = vadd.f32 %v536_v55, %v535_v46  ;;  %v1296_v16 = vpack.c.bf16 %v834_v14, %v833_v13  ;;  %v838_v20 = vld [vmem:[%s2486_s5 + $0x28] sm:$0xff]  ;;  %v938_v57 = vld [vmem:[%s2488_s7 + $0x58] sm:$0xff] }
  0x72   :  { %v602_v24 = vadd.f32 %v601_v17, %v296_v12  ;;  %v1293_v12 = vpack.c.bf16 %v754_v11, %v753_v10  ;;  %v836_v17 = vld [vmem:[%s2486_s5 + $0x18] sm:$0xff]  ;;  %v1302_v21 = vpack.c.bf16 %v838_v20, %v837_v19 }
  0x73   :  { %v571_v32 = vrot.slane %v570_v27, 4  ;;  %v633_v4 = vsel %vm632_vm6, %v537_v61, %v631_v63 }
  0x74   :  { %v603_v29 = vadd.f32 %v602_v24, %v297_v18  ;;  %1294 = vmatpush3.bf16.msra.mxu1 %v1293_v12  ;;  %v1299_v18 = vpack.c.bf16 %v836_v17, %v835_v15  ;;  %v1305_v24 = vpack.c.bf16 %v840_v23, %v839_v22  ;;  %v1038_v12 = vld [vmem:[%s2489_s8] ss:$0 sm:$0xff] }
  0x75   :  { %v572_v39 = vadd.f32 %v571_v32, %v570_v27  ;;  %1319 = vmatprep.subr.bf16.mxu1 %v1371_v3  ;;  %v846_v32 = vld [vmem:[%s2486_s5 + $0x68] sm:$0xff] }
  0x76   :  { %v604_v36 = vadd.f32 %v603_v29, %v298_v25  ;;  %v841_v25 = vld [vmem:[%s2486_s5 + $0x40] sm:$0xff]  ;;  %v844_v29 = vld [vmem:[%s2486_s5 + $0x58] sm:$0xff]  ;;  %v1314_v33 = vpack.c.bf16 %v846_v32, %v845_v31 }
  0x77   :  { %v573_v45 = vrot.slane %v572_v39, 2  ;;  %v1308_v27 = vpack.c.bf16 %v842_v26, %v841_v25 }
  0x78   :  { %v605_v42 = vadd.f32 %v604_v36, %v299_v30  ;;  %v1311_v30 = vpack.c.bf16 %v844_v29, %v843_v28 }
  0x79   :  { %v574_v53 = vadd.f32 %v573_v45, %v572_v39  ;;  %v847_v39 = vld [vmem:[%s2486_s5 + $0x70] sm:$0xff]  ;;  %v930_v45 = vld [vmem:[%s2488_s7 + $0x18] sm:$0xff] }
  0x7a   :  { %v606_v47 = vadd.f32 %v605_v42, %v300_v37  ;;  %v1317_v41 = vpack.c.bf16 %v848_v40, %v847_v39  ;;  %v927_v42 = vld [vmem:[%s2488_s7] sm:$0xff] }
  0x7b   :  { %v575_v60 = vrot.slane %v574_v53, 1 }
  0x7c   :  { %v607_v52 = vadd.f32 %v606_v47, %v301_v43  ;;  %v928_v43 = vld [vmem:[%s2488_s7 + $0x8] sm:$0xff]  ;;  %v931_v47 = vld [vmem:[%s2488_s7 + $0x20] sm:$0xff] }
  0x7d   :  { %v576_v1 = vadd.f32 %v575_v60, %v574_v53  ;;  %v1320_v44 = vpack.c.bf16 %v928_v43, %v927_v42  ;;  %v1326_v49 = vpack.c.bf16 %v932_v48, %v931_v47  ;;  %v935_v53 = vld [vmem:[%s2488_s7 + $0x40] sm:$0xff]  ;;  %v940_v60 = vld [vmem:[%s2488_s7 + $0x68] sm:$0xff] }
  0x7e   :  { %v609_v56 = vadd.f32 %v608_v50, %v607_v52  ;;  %v933_v50 = vld [vmem:[%s2488_s7 + $0x30] sm:$0xff]  ;;  %v1332_v55 = vpack.c.bf16 %v936_v54, %v935_v53  ;;  %v1338_v61 = vpack.c.bf16 %v940_v60, %v939_v59 }
  0x7f   :  { %v635_v7 = vsel %vm634_vm7, %v576_v1, %v633_v4  ;;  %v1329_v52 = vpack.c.bf16 %v934_v51, %v933_v50  ;;  %v941_v4 = vld [vmem:[%s2488_s7 + $0x70] sm:$0xff] }
  0x80   :  { %v610_v58 = vrot.slane %v609_v56, 4 }
  0x82   :  { %v611_v62 = vadd.f32 %v610_v58, %v609_v56  ;;  %v937_v56 = vld [vmem:[%s2488_s7 + $0x50] sm:$0xff] }
  0x83   :  { %v1335_v58 = vpack.c.bf16 %v938_v57, %v937_v56 }
  0x84   :  { %v612_v0 = vrot.slane %v611_v62, 2 }
  0x86   :  { %v613_v2 = vadd.f32 %v612_v0, %v611_v62  ;;  %v1036_v62 = vld [vmem:[%s2485_s4] ss:$0 sm:$0xff] }
  0x88   :  { %v614_v5 = vrot.slane %v613_v2, 1 }
  0x8a   :  { %v615_v8 = vadd.f32 %v614_v5, %v613_v2  ;;  %v942_v5 = vld [vmem:[%s2488_s7 + $0x78] sm:$0xff] }
  0x8c   :  { %v637_v9 = vsel %vm636_vm8, %v615_v8, %v635_v7  ;;  %v1341_v7 = vpack.c.bf16 %v942_v5, %v941_v4 }
  0x8d   :  { %1140 = vmatmul.mubr.f32.vlgmr.msra.gmra.mrb[0].mxu0 %v637_v9 }
  0x8e   :  { %1209 = vmatprep.mubr.msk.f32.mxu0 %vm1372_vm0, %v1373_v6  ;;  %1297 = vmatpush3.bf16.msra.mxu0 %v1296_v16 }
  0x8f   :  { %1298 = vmatprep.subr.bf16.mxu0 %v1371_v3 }
  0x92   :  { %1300 = vmatpush3.bf16.msra.mxu0 %v1299_v18 }
  0x93   :  { %1301 = vmatprep.subr.bf16.mxu0 %v1371_v3 }
  0x96   :  { %1303 = vmatpush3.bf16.msra.mxu0 %v1302_v21 }
  0x97   :  { %1304 = vmatprep.subr.bf16.mxu0 %v1371_v3 }
  0x9a   :  { %1306 = vmatpush3.bf16.msra.mxu0 %v1305_v24 }
  0x9b   :  { %1307 = vmatprep.subr.bf16.mxu0 %v1371_v3 }
  0x9e   :  { %1309 = vmatpush3.bf16.msra.mxu0 %v1308_v27 }
  0x9f   :  { %1310 = vmatprep.subr.bf16.mxu0 %v1371_v3 }
  0xa2   :  { %1312 = vmatpush3.bf16.msra.mxu0 %v1311_v30 }
  0xa3   :  { %1313 = vmatprep.subr.bf16.mxu0 %v1371_v3 }
  0xa6   :  { %1315 = vmatpush3.bf16.msra.mxu0 %v1314_v33 }
  0xa7   :  { %1316 = vmatprep.subr.bf16.mxu0 %v1371_v3 }
  0xaa   :  { %1318 = vmatpush3.bf16.msra.mxu0 %v1317_v41 }
 0x160   :  { %v734_v35 = vpop.f32.mrb[0].mxu0 }
 0x161   :  { %v735_v36 = vadd.f32 %v1035_v34, %v734_v35  ;;  %v1141_v37 = vpop.f32.mrb[1].mxu0 }
 0x163   :  { %v738_v38 = vmax.f32 %v735_v36, 0.0 }
 0x165   :  { %1175 = vmatmul.mubr.f32.vlgmr.msra.gmra.mrb[0].mxu1 %v738_v38 }
 0x166   :  { %1244 = vmatprep.mubr.msk.f32.mxu1 %vm1372_vm0, %v1373_v6  ;;  %v929_v6 = vld [vmem:[%s2488_s7 + $0x10] sm:$0xff]  ;;  %1321 = vmatpush3.bf16.msra.mxu1 %v1320_v44  ;;  %s1347_s7 = scalar_lea.vmem %s1028_s0, 128 }
 0x167   :  { %v1323_v46 = vpack.c.bf16 %v930_v45, %v929_v6  ;;  %1322 = vmatprep.subr.bf16.mxu1 %v1371_v3  ;;  %p1348_p0 = scmp.ne.s32.totalorder %s1028_s0, %s1347_s7  ;;  %p1353_p2 = scmp.lt.s32.totalorder %s1347_s7, %s1347_s7 }
 0x169   :  { %p1354_p3 = por %p1353_p2, %p1352_p1 }
 0x16a   :  { %1324 = vmatpush3.bf16.msra.mxu1 %v1323_v46 }
 0x16b   :  { %1325 = vmatprep.subr.bf16.mxu1 %v1371_v3  ;;  %p1355_p4 = pnand %p1354_p3, %p1348_p0 }
 0x16e   :  { %1327 = vmatpush3.bf16.msra.mxu1 %v1326_v49 }
 0x16f   :  { %1328 = vmatprep.subr.bf16.mxu1 %v1371_v3 }
 0x172   :  { %1330 = vmatpush3.bf16.msra.mxu1 %v1329_v52 }
 0x173   :  { %1331 = vmatprep.subr.bf16.mxu1 %v1371_v3 }
 0x176   :  { %1333 = vmatpush3.bf16.msra.mxu1 %v1332_v55 }
 0x177   :  { %1334 = vmatprep.subr.bf16.mxu1 %v1371_v3 }
 0x17a   :  { %1336 = vmatpush3.bf16.msra.mxu1 %v1335_v58 }
 0x17b   :  { %1337 = vmatprep.subr.bf16.mxu1 %v1371_v3 }
 0x17e   :  { %1339 = vmatpush3.bf16.msra.mxu1 %v1338_v61 }
 0x17f   :  { %1340 = vmatprep.subr.bf16.mxu1 %v1371_v3  ;;  %v1037_v3 = vld [vmem:[%s2487_s6] ss:$0 sm:$0xff] }
 0x182   :  { %1342 = vmatpush3.bf16.msra.mxu1 %v1341_v7 }
 0x238   :  { %v828_v63 = vpop.f32.mrb[0].mxu1 }
 0x239   :  { %v829_v0 = vadd.f32 %v1036_v62, %v828_v63  ;;  %v1176_v1 = vpop.f32.mrb[1].mxu1 }
 0x23b   :  { %v832_v2 = vmax.f32 %v829_v0, 0.0 }
 0x23d   :  { %1210 = vmatmul.mubr.f32.vlgmr.msra.gmra.mrb[2].mxu0 %v832_v2 }
 0x310   :  { %v922_v8 = vpop.f32.mrb[2].mxu0 }
 0x311   :  { %v923_v9 = vadd.f32 %v1037_v3, %v922_v8  ;;  %v1211_v10 = vpop.f32.mrb[3].mxu0 }
 0x313   :  { %v926_v11 = vmax.f32 %v923_v9, 0.0 }
 0x315   :  { %1245 = vmatmul.mubr.f32.vlgmr.msra.gmra.mrb[2].mxu1 %v926_v11 }
 0x3e8   :  { %v1016_v13 = vpop.f32.mrb[2].mxu1 }
 0x3e9   :  { %v1017_v14 = vadd.f32 %v1038_v12, %v1016_v13  ;;  %v1246_v15 = vpop.f32.mrb[3].mxu1 }
 0x3eb   :  { %1020 = vst [vmem:[#allocation3] sm:$0xff] %v1017_v14 }
 0x3ec   :  { %1358 = shalt.err (!%p1355_p4)
}
 0x3ed   :  { %s1359_s28 = scalar_lea.hbm %s2490_s9, 128 }
 0x3ee   :  { %p1360_p5 = scmp.ne.s32.totalorder %s2490_s9, %s1359_s28  ;;  %p1363_p6 = scmp.lt.u32.totalorder %s1359_s28, %s2490_s9 }
 0x3f0   :  { %p1365_p7 = pnand %p1363_p6, %p1360_p5 }
 0x3f2   :  { %1368 = shalt.err (!%p1365_p7)
}
 0x3f3   :  { %1030 = dma.vmem_to_hbm [thread:$0]  %s1028_s0, 128, %s2490_s9, [#allocation4]  }
 0x3f4   :  { %1369 = dma.done.wait [#allocation4], 128  }
 0x3f5   :  { %1370 = vsyncadd [#allocation4], 4294967168 }
 0x3f6   :  { %1034 = vsyncpa [#allocation4], 1 }

</bundles_post_ra>
